<compile_context>
chip_gen: v7x
topology: tpu7x:2x2x1
jax: 0.10.0
libtpu: 0.0.40
codegen_flags: <defaults>
</compile_context>

<pallas_src>
import functools

import jax
import jax.numpy as jnp
from jax.experimental import pallas as pl
from jax.experimental.pallas import tpu as pltpu

EPS = 1e-5        # nn.LayerNorm default eps
NEG_INF = -1e20   # same constant as the PyTorch masked_fill


def transformer_block_kernel(
    x_ref,                    # (Nb, Tq, E)  query tile: residual path + Q source
    k_ref, v_ref,             # (Nb, S,  E)  full key / value rows for this batch block
    mask_ref,                 # (Nb, Tq, S)  int8 raw mask (0 = masked out)
    wq_ref, wk_ref, wv_ref,   # (E, E)       block-diagonal per-head projections
    wo_ref, bo_ref,           # (E, E), (1, E)
    g1_ref, b1_ref,           # (1, E)
    w1_ref, bf1_ref,          # (E, F), (1, F)
    w2_ref, bf2_ref,          # (F, E), (1, E)
    g2_ref, b2_ref,           # (1, E)
    out_ref,                  # (Nb, Tq, E)
    *, heads, head_dim, embed_size, matmul_dtype,
):
    H, D, E = heads, head_dim, embed_size
    Nb, Tq, _ = x_ref.shape
    S = k_ref.shape[1]
    md = matmul_dtype
    inv_scale = jnp.float32(1.0 / (embed_size ** 0.5))

    x = x_ref[...].astype(jnp.float32)                      # (Nb, Tq, E)
    x2 = x.reshape(Nb * Tq, E)
    k_in = k_ref[...].reshape(Nb * S, E)
    v_in = v_ref[...].reshape(Nb * S, E)

    # --- Q/K/V projections: one lane-dense (., E) @ (E, E) matmul each ---------------
    # 1/sqrt(E) softmax scale folded into Q ((rows, E) multiply, not (S, S)).
    qs = jnp.dot(x2.astype(md), wq_ref[...],
                 preferred_element_type=jnp.float32) * inv_scale
    ks = jnp.dot(k_in.astype(md), wk_ref[...], preferred_element_type=jnp.float32)
    vs = jnp.dot(v_in.astype(md), wv_ref[...], preferred_element_type=jnp.float32)

    qs = qs.reshape(Nb, Tq, E)
    ks = ks.reshape(Nb, S, E)
    vs = vs.reshape(Nb, S, E)

    keep = mask_ref[...] != 0                                # (Nb, Tq, S) bool

    # --- attention, per head (H is small & static); scores bounded to (Nb, Tq, S) ----
    ctx_heads = []
    for h in range(H):
        sl = slice(h * D, (h + 1) * D)
        q_h = qs[:, :, sl].astype(md)                        # (Nb, Tq, D)
        k_h = ks[:, :, sl].astype(md)                        # (Nb, S,  D)
        v_h = vs[:, :, sl].astype(md)                        # (Nb, S,  D)

        energy = jnp.einsum('bqd,bkd->bqk', q_h, k_h,
                            preferred_element_type=jnp.float32)   # (Nb, Tq, S)
        energy = jnp.where(keep, energy, jnp.float32(NEG_INF))

        m = jnp.max(energy, axis=-1, keepdims=True)
        p = jnp.exp(energy - m)
        denom = jnp.sum(p, axis=-1, keepdims=True)
        attn = p * pl.reciprocal(denom, approx=True)              # EUP reciprocal

        ctx_heads.append(jnp.einsum('bqk,bkd->bqd', attn.astype(md), v_h,
                                    preferred_element_type=jnp.float32))

    ctx = jnp.concatenate(ctx_heads, axis=-1).reshape(Nb * Tq, E)

    # --- fc_out: one full-depth (K = E) matmul ----------------------------------------
    attn_out = jnp.dot(ctx.astype(md), wo_ref[...],
                       preferred_element_type=jnp.float32) + bo_ref[...]

    def layer_norm(y, g, b):
        mu = jnp.mean(y, axis=-1, keepdims=True)
        var = jnp.mean(jnp.square(y - mu), axis=-1, keepdims=True)
        return (y - mu) * jax.lax.rsqrt(var + EPS) * g + b

    # --- residual + norm1 (dropout == identity) ---------------------------------------
    x1 = layer_norm(x2 + attn_out, g1_ref[...], b1_ref[...])       # (Nb*Tq, E)

    # --- feed-forward on the same row tile --------------------------------------------
    hid = jnp.dot(x1.astype(md), w1_ref[...],
                  preferred_element_type=jnp.float32) + bf1_ref[...]
    hid = jnp.maximum(hid, 0.0)
    ffn = jnp.dot(hid.astype(md), w2_ref[...],
                  preferred_element_type=jnp.float32) + bf2_ref[...]

    # --- residual + norm2 --------------------------------------------------------------
    out = layer_norm(x1 + ffn, g2_ref[...], b2_ref[...])
    out_ref[...] = out.reshape(Nb, Tq, E).astype(out_ref.dtype)


def transformer_block(value, key, query, mask, params, *, heads,
                      batch_block=1, q_block=None, matmul_dtype=jnp.float32):
    N, S, E = query.shape
    H = heads
    D = E // H
    assert H * D == E, "embed_size must be divisible by heads"
    Nb = batch_block
    assert N % Nb == 0, "batch_block must divide the batch size"
    Tq = S if q_block is None else q_block
    assert S % Tq == 0, "q_block must divide the sequence length"
    assert Tq == S or Tq % 8 == 0, "query tile must be sublane aligned"

    md = matmul_dtype

    # Per-head (D, D) Linear (shared across heads) -> block-diagonal (E, E) weight so
    # the projection is a single lane-dense matmul.  Built once, wrapper-side.
    def block_diag(w):
        return jnp.kron(jnp.eye(H, dtype=w.dtype), w)

    wq = block_diag(params["wq"]).astype(md)
    wk = block_diag(params["wk"]).astype(md)
    wv = block_diag(params["wv"]).astype(md)
    wo = params["wo"].astype(md)
    w1 = params["w1"].astype(md)
    w2 = params["w2"].astype(md)

    # Raw mask as int8 (1 byte/elem): select happens per tile in-kernel.
    mask_i8 = (jnp.broadcast_to(mask, (N, 1, S, S))[:, 0] != 0).astype(jnp.int8)

    f32 = jnp.float32
    param_list = [
        wq, wk, wv,
        wo, params["bo"].astype(f32),
        params["g1"].astype(f32), params["b1"].astype(f32),
        w1, params["bf1"].astype(f32),
        w2, params["bf2"].astype(f32),
        params["g2"].astype(f32), params["b2"].astype(f32),
    ]

    x_spec = pl.BlockSpec((Nb, Tq, E), lambda n, q: (n, q, 0))
    out_spec = pl.BlockSpec((Nb, Tq, E), lambda n, q: (n, q, 0))
    kv_spec = pl.BlockSpec((Nb, S, E), lambda n, q: (n, 0, 0))
    mask_spec = pl.BlockSpec((Nb, Tq, S), lambda n, q: (n, q, 0))

    def full_spec(shape):
        nd = len(shape)
        return pl.BlockSpec(shape, lambda n, q, _nd=nd: (0,) * _nd)

    kernel = functools.partial(
        transformer_block_kernel,
        heads=H, head_dim=D, embed_size=E, matmul_dtype=md,
    )

    return pl.pallas_call(
        kernel,
        out_shape=jax.ShapeDtypeStruct((N, S, E), query.dtype),
        grid=(N // Nb, S // Tq),
        in_specs=[x_spec, kv_spec, kv_spec, mask_spec]
                 + [full_spec(p.shape) for p in param_list],
        out_specs=out_spec,
        compiler_params=pltpu.CompilerParams(
            dimension_semantics=("parallel", "parallel"),
            vmem_limit_bytes=64 * 1024 * 1024,
        ),
    )(query, key, value, mask_i8, *param_list)


def reference(value, key, query, mask, params, *, heads):
    """Pure-JAX port of the PyTorch TransformerBlock forward (eval mode)."""
    N, S, E = query.shape
    D = E // heads

    def proj(x, w):
        return x.reshape(N, S, heads, D) @ w

    qs = proj(query, params["wq"])
    ks = proj(key, params["wk"])
    vs = proj(value, params["wv"])
    energy = jnp.einsum("nqhd,nkhd->nhqk", qs, ks)
    energy = jnp.where(mask == 0, NEG_INF, energy)
    attn = jax.nn.softmax(energy / (E ** 0.5), axis=-1)
    o = jnp.einsum("nhqk,nkhd->nqhd", attn, vs).reshape(N, S, E)
    o = o @ params["wo"] + params["bo"]

    def ln(x, g, b):
        mu = x.mean(-1, keepdims=True)
        var = ((x - mu) ** 2).mean(-1, keepdims=True)
        return (x - mu) / jnp.sqrt(var + EPS) * g + b

    x = ln(query + o, params["g1"], params["b1"])
    ffn = jnp.maximum(x @ params["w1"] + params["bf1"], 0.0) @ params["w2"] + params["bf2"]
    return ln(x + ffn, params["g2"], params["b2"])


if __name__ == "__main__":
    # Small shapes consistent with the module.
    N, S, E = 2, 8, 32
    HEADS = 4
    D = E // HEADS
    FE = 4                      # forward_expansion
    HFF = FE * E                # 128

    root = jax.random.PRNGKey(0)
    ks = jax.random.split(root, 16)

    params = {
        "wq": jax.random.normal(ks[0], (D, D), jnp.float32) * 0.2,
        "wk": jax.random.normal(ks[1], (D, D), jnp.float32) * 0.2,
        "wv": jax.random.normal(ks[2], (D, D), jnp.float32) * 0.2,
        "wo": jax.random.normal(ks[3], (E, E), jnp.float32) * 0.1,
        "bo": jax.random.normal(ks[4], (1, E), jnp.float32) * 0.05,
        "g1": 1.0 + jax.random.normal(ks[5], (1, E), jnp.float32) * 0.05,
        "b1": jax.random.normal(ks[6], (1, E), jnp.float32) * 0.05,
        "w1": jax.random.normal(ks[7], (E, HFF), jnp.float32) * 0.1,
        "bf1": jax.random.normal(ks[8], (1, HFF), jnp.float32) * 0.05,
        "w2": jax.random.normal(ks[9], (HFF, E), jnp.float32) * 0.1,
        "bf2": jax.random.normal(ks[10], (1, E), jnp.float32) * 0.05,
        "g2": 1.0 + jax.random.normal(ks[11], (1, E), jnp.float32) * 0.05,
        "b2": jax.random.normal(ks[12], (1, E), jnp.float32) * 0.05,
    }

    value = jax.random.normal(ks[13], (N, S, E), jnp.float32)
    key_t = jax.random.normal(ks[14], (N, S, E), jnp.float32)
    query = jax.random.normal(ks[15], (N, S, E), jnp.float32)
    # Causal-style mask (1 = keep, 0 = masked), broadcast over heads.
    mask = jnp.broadcast_to(jnp.tril(jnp.ones((S, S), jnp.float32)), (N, 1, S, S))

    ref = reference(value, key_t, query, mask, params, heads=HEADS)

    # f32 MXU path; batch axis is a parallel grid (>=2 steps -> both v7x TCs used).
    out_f32 = transformer_block(value, key_t, query, mask, params,
                                heads=HEADS, batch_block=1,
                                matmul_dtype=jnp.float32)
    out_f32 = jax.block_until_ready(out_f32)
    assert out_f32.shape == (N, S, E) and out_f32.dtype == jnp.float32
    err = jnp.max(jnp.abs(out_f32 - ref))
    assert jnp.allclose(out_f32, ref, rtol=5e-3, atol=5e-3), f"f32 max abs err {err}"

    # bf16 MXU path (weights shipped in bf16, f32 accumulation / f32 softmax + LN):
    # the recommended config for v6e/v7x; tolerance relaxed accordingly.
    out_bf16 = transformer_block(value, key_t, query, mask, params,
                                 heads=HEADS, batch_block=1,
                                 matmul_dtype=jnp.bfloat16)
    out_bf16 = jax.block_until_ready(out_bf16)
    err_bf = jnp.max(jnp.abs(out_bf16 - ref))
    assert jnp.allclose(out_bf16, ref, rtol=7.5e-2, atol=7.5e-2), \
        f"bf16 max abs err {err_bf}"

    print("KERNEL_OK")
</pallas_src>

<mosaic_0001>
module attributes {stable_mosaic.version = 11 : i64} {
  func.func @transformer_block_kernel(%arg0: i32, %arg1: i32, %arg2: memref<1x8x32xf32, #tpu.memory_space<vmem>>, %arg3: memref<1x8x32xf32, #tpu.memory_space<vmem>>, %arg4: memref<1x8x32xf32, #tpu.memory_space<vmem>>, %arg5: memref<1x8x8xi8, #tpu.memory_space<vmem>>, %arg6: memref<32x32xf32, #tpu.memory_space<vmem>>, %arg7: memref<32x32xf32, #tpu.memory_space<vmem>>, %arg8: memref<32x32xf32, #tpu.memory_space<vmem>>, %arg9: memref<32x32xf32, #tpu.memory_space<vmem>>, %arg10: memref<1x32xf32, #tpu.memory_space<vmem>>, %arg11: memref<1x32xf32, #tpu.memory_space<vmem>>, %arg12: memref<1x32xf32, #tpu.memory_space<vmem>>, %arg13: memref<32x128xf32, #tpu.memory_space<vmem>>, %arg14: memref<1x128xf32, #tpu.memory_space<vmem>>, %arg15: memref<128x32xf32, #tpu.memory_space<vmem>>, %arg16: memref<1x32xf32, #tpu.memory_space<vmem>>, %arg17: memref<1x32xf32, #tpu.memory_space<vmem>>, %arg18: memref<1x32xf32, #tpu.memory_space<vmem>>, %arg19: memref<1x8x32xf32, #tpu.memory_space<vmem>>) attributes {dimension_semantics = [#tpu.dimension_semantics<parallel>, #tpu.dimension_semantics<parallel>], iteration_bounds = array<i64: 2, 1>, scalar_prefetch = 0 : i64, scratch_operands = 0 : i64, tpu.core_type = #tpu.core_type<tc>, window_params = [{transform_indices = @transform_0, window_bounds = array<i64: 1, 8, 32>}, {transform_indices = @transform_1, window_bounds = array<i64: 1, 8, 32>}, {transform_indices = @transform_2, window_bounds = array<i64: 1, 8, 32>}, {transform_indices = @transform_3, window_bounds = array<i64: 1, 8, 8>}, {pipeline_mode = #tpu.pipeline_mode<synchronous>, transform_indices = @transform_4, window_bounds = array<i64: 32, 32>}, {pipeline_mode = #tpu.pipeline_mode<synchronous>, transform_indices = @transform_5, window_bounds = array<i64: 32, 32>}, {pipeline_mode = #tpu.pipeline_mode<synchronous>, transform_indices = @transform_6, window_bounds = array<i64: 32, 32>}, {pipeline_mode = #tpu.pipeline_mode<synchronous>, transform_indices = @transform_7, window_bounds = array<i64: 32, 32>}, {pipeline_mode = #tpu.pipeline_mode<synchronous>, transform_indices = @transform_8, window_bounds = array<i64: 1, 32>}, {pipeline_mode = #tpu.pipeline_mode<synchronous>, transform_indices = @transform_9, window_bounds = array<i64: 1, 32>}, {pipeline_mode = #tpu.pipeline_mode<synchronous>, transform_indices = @transform_10, window_bounds = array<i64: 1, 32>}, {pipeline_mode = #tpu.pipeline_mode<synchronous>, transform_indices = @transform_11, window_bounds = array<i64: 32, 128>}, {pipeline_mode = #tpu.pipeline_mode<synchronous>, transform_indices = @transform_12, window_bounds = array<i64: 1, 128>}, {pipeline_mode = #tpu.pipeline_mode<synchronous>, transform_indices = @transform_13, window_bounds = array<i64: 128, 32>}, {pipeline_mode = #tpu.pipeline_mode<synchronous>, transform_indices = @transform_14, window_bounds = array<i64: 1, 32>}, {pipeline_mode = #tpu.pipeline_mode<synchronous>, transform_indices = @transform_15, window_bounds = array<i64: 1, 32>}, {pipeline_mode = #tpu.pipeline_mode<synchronous>, transform_indices = @transform_16, window_bounds = array<i64: 1, 32>}, {transform_indices = @transform_17, window_bounds = array<i64: 1, 8, 32>}]} {
    %c0 = arith.constant 0 : index
    %c0_0 = arith.constant 0 : index
    %c0_1 = arith.constant 0 : index
    %0 = vector.load %arg2[%c0, %c0_0, %c0_1] : memref<1x8x32xf32, #tpu.memory_space<vmem>>, vector<1x8x32xf32>
    %1 = vector.shape_cast %0 : vector<1x8x32xf32> to vector<8x32xf32>
    %c0_2 = arith.constant 0 : index
    %c0_3 = arith.constant 0 : index
    %c0_4 = arith.constant 0 : index
    %2 = vector.load %arg3[%c0_2, %c0_3, %c0_4] : memref<1x8x32xf32, #tpu.memory_space<vmem>>, vector<1x8x32xf32>
    %3 = vector.shape_cast %2 : vector<1x8x32xf32> to vector<8x32xf32>
    %c0_5 = arith.constant 0 : index
    %c0_6 = arith.constant 0 : index
    %c0_7 = arith.constant 0 : index
    %4 = vector.load %arg4[%c0_5, %c0_6, %c0_7] : memref<1x8x32xf32, #tpu.memory_space<vmem>>, vector<1x8x32xf32>
    %5 = vector.shape_cast %4 : vector<1x8x32xf32> to vector<8x32xf32>
    %c0_8 = arith.constant 0 : index
    %c0_9 = arith.constant 0 : index
    %6 = vector.load %arg6[%c0_8, %c0_9] : memref<32x32xf32, #tpu.memory_space<vmem>>, vector<32x32xf32>
    %cst = arith.constant dense<0.000000e+00> : vector<8x32xf32>
    %7 = tpu.matmul %1, %6, %cst {dimension_numbers = #tpu.dot_dimension_numbers<[1], [0], [0], [1], [0, 0, 1, 1], [], []>} : vector<8x32xf32>, vector<32x32xf32>, vector<8x32xf32> -> vector<8x32xf32>
    %cst_10 = arith.constant 0.176776692 : f32
    %8 = vector.broadcast %cst_10 : f32 to vector<8x32xf32>
    %9 = arith.mulf %7, %8 : vector<8x32xf32>
    %c0_11 = arith.constant 0 : index
    %c0_12 = arith.constant 0 : index
    %10 = vector.load %arg7[%c0_11, %c0_12] : memref<32x32xf32, #tpu.memory_space<vmem>>, vector<32x32xf32>
    %cst_13 = arith.constant dense<0.000000e+00> : vector<8x32xf32>
    %11 = tpu.matmul %3, %10, %cst_13 {dimension_numbers = #tpu.dot_dimension_numbers<[1], [0], [0], [1], [0, 0, 1, 1], [], []>} : vector<8x32xf32>, vector<32x32xf32>, vector<8x32xf32> -> vector<8x32xf32>
    %c0_14 = arith.constant 0 : index
    %c0_15 = arith.constant 0 : index
    %12 = vector.load %arg8[%c0_14, %c0_15] : memref<32x32xf32, #tpu.memory_space<vmem>>, vector<32x32xf32>
    %cst_16 = arith.constant dense<0.000000e+00> : vector<8x32xf32>
    %13 = tpu.matmul %5, %12, %cst_16 {dimension_numbers = #tpu.dot_dimension_numbers<[1], [0], [0], [1], [0, 0, 1, 1], [], []>} : vector<8x32xf32>, vector<32x32xf32>, vector<8x32xf32> -> vector<8x32xf32>
    %14 = vector.shape_cast %9 : vector<8x32xf32> to vector<1x8x32xf32>
    %15 = vector.shape_cast %11 : vector<8x32xf32> to vector<1x8x32xf32>
    %16 = vector.shape_cast %13 : vector<8x32xf32> to vector<1x8x32xf32>
    %c0_17 = arith.constant 0 : index
    %c0_18 = arith.constant 0 : index
    %c0_19 = arith.constant 0 : index
    %17 = vector.load %arg5[%c0_17, %c0_18, %c0_19] : memref<1x8x8xi8, #tpu.memory_space<vmem>>, vector<1x8x8xi8>
    %c0_i8 = arith.constant 0 : i8
    %18 = vector.broadcast %c0_i8 : i8 to vector<1x8x8xi8>
    %19 = arith.cmpi ne, %17, %18 : vector<1x8x8xi8>
    %20 = vector.extract_strided_slice %14 {offsets = [0, 0, 0], sizes = [1, 8, 8], strides = [1, 1, 1]} : vector<1x8x32xf32> to vector<1x8x8xf32>
    %21 = vector.extract_strided_slice %15 {offsets = [0, 0, 0], sizes = [1, 8, 8], strides = [1, 1, 1]} : vector<1x8x32xf32> to vector<1x8x8xf32>
    %22 = vector.extract_strided_slice %16 {offsets = [0, 0, 0], sizes = [1, 8, 8], strides = [1, 1, 1]} : vector<1x8x32xf32> to vector<1x8x8xf32>
    "tpu.trace_start"() <{level = 10 : i32, message = "bqd,bkd->bqk"}> : () -> ()
    %cst_20 = arith.constant dense<0.000000e+00> : vector<1x8x8xf32>
    %23 = tpu.matmul %20, %21, %cst_20 {dimension_numbers = #tpu.dot_dimension_numbers<[2], [2], [1], [1], [0, 0, 0, 1, 1, 1], [0], [0]>} : vector<1x8x8xf32>, vector<1x8x8xf32>, vector<1x8x8xf32> -> vector<1x8x8xf32>
    %cst_21 = arith.constant -1.000000e+20 : f32
    "tpu.trace_stop"() : () -> ()
    %24 = vector.broadcast %cst_21 : f32 to vector<1x8x8xf32>
    %25 = arith.select %19, %23, %24 : vector<1x8x8xi1>, vector<1x8x8xf32>
    %cst_22 = arith.constant dense<0xFF800000> : vector<1x8xf32>
    %26 = vector.multi_reduction <maximumf>, %25, %cst_22 [2] : vector<1x8x8xf32> to vector<1x8xf32>
    %27 = vector.shape_cast %26 : vector<1x8xf32> to vector<1x8x1xf32>
    %28 = vector.broadcast %27 : vector<1x8x1xf32> to vector<1x8x8xf32>
    %29 = arith.subf %25, %28 : vector<1x8x8xf32>
    %30 = math.exp %29 : vector<1x8x8xf32>
    %cst_23 = arith.constant dense<0.000000e+00> : vector<1x8xf32>
    %31 = vector.multi_reduction <add>, %30, %cst_23 [2] : vector<1x8x8xf32> to vector<1x8xf32>
    %32 = vector.shape_cast %31 : vector<1x8xf32> to vector<1x8x1xf32>
    %33 = tpu.reciprocal %32 {approx = true} : vector<1x8x1xf32> -> vector<1x8x1xf32>
    %34 = vector.broadcast %33 : vector<1x8x1xf32> to vector<1x8x8xf32>
    %35 = arith.mulf %30, %34 : vector<1x8x8xf32>
    "tpu.trace_start"() <{level = 10 : i32, message = "bqk,bkd->bqd"}> : () -> ()
    %cst_24 = arith.constant dense<0.000000e+00> : vector<1x8x8xf32>
    %36 = tpu.matmul %35, %22, %cst_24 {dimension_numbers = #tpu.dot_dimension_numbers<[2], [1], [1], [2], [0, 0, 0, 1, 1, 2], [0], [0]>} : vector<1x8x8xf32>, vector<1x8x8xf32>, vector<1x8x8xf32> -> vector<1x8x8xf32>
    "tpu.trace_stop"() : () -> ()
    %37 = vector.extract_strided_slice %14 {offsets = [0, 0, 8], sizes = [1, 8, 8], strides = [1, 1, 1]} : vector<1x8x32xf32> to vector<1x8x8xf32>
    %38 = vector.extract_strided_slice %15 {offsets = [0, 0, 8], sizes = [1, 8, 8], strides = [1, 1, 1]} : vector<1x8x32xf32> to vector<1x8x8xf32>
    %39 = vector.extract_strided_slice %16 {offsets = [0, 0, 8], sizes = [1, 8, 8], strides = [1, 1, 1]} : vector<1x8x32xf32> to vector<1x8x8xf32>
    "tpu.trace_start"() <{level = 10 : i32, message = "bqd,bkd->bqk"}> : () -> ()
    %cst_25 = arith.constant dense<0.000000e+00> : vector<1x8x8xf32>
    %40 = tpu.matmul %37, %38, %cst_25 {dimension_numbers = #tpu.dot_dimension_numbers<[2], [2], [1], [1], [0, 0, 0, 1, 1, 1], [0], [0]>} : vector<1x8x8xf32>, vector<1x8x8xf32>, vector<1x8x8xf32> -> vector<1x8x8xf32>
    %cst_26 = arith.constant -1.000000e+20 : f32
    "tpu.trace_stop"() : () -> ()
    %41 = vector.broadcast %cst_26 : f32 to vector<1x8x8xf32>
    %42 = arith.select %19, %40, %41 : vector<1x8x8xi1>, vector<1x8x8xf32>
    %cst_27 = arith.constant dense<0xFF800000> : vector<1x8xf32>
    %43 = vector.multi_reduction <maximumf>, %42, %cst_27 [2] : vector<1x8x8xf32> to vector<1x8xf32>
    %44 = vector.shape_cast %43 : vector<1x8xf32> to vector<1x8x1xf32>
    %45 = vector.broadcast %44 : vector<1x8x1xf32> to vector<1x8x8xf32>
    %46 = arith.subf %42, %45 : vector<1x8x8xf32>
    %47 = math.exp %46 : vector<1x8x8xf32>
    %cst_28 = arith.constant dense<0.000000e+00> : vector<1x8xf32>
    %48 = vector.multi_reduction <add>, %47, %cst_28 [2] : vector<1x8x8xf32> to vector<1x8xf32>
    %49 = vector.shape_cast %48 : vector<1x8xf32> to vector<1x8x1xf32>
    %50 = tpu.reciprocal %49 {approx = true} : vector<1x8x1xf32> -> vector<1x8x1xf32>
    %51 = vector.broadcast %50 : vector<1x8x1xf32> to vector<1x8x8xf32>
    %52 = arith.mulf %47, %51 : vector<1x8x8xf32>
    "tpu.trace_start"() <{level = 10 : i32, message = "bqk,bkd->bqd"}> : () -> ()
    %cst_29 = arith.constant dense<0.000000e+00> : vector<1x8x8xf32>
    %53 = tpu.matmul %52, %39, %cst_29 {dimension_numbers = #tpu.dot_dimension_numbers<[2], [1], [1], [2], [0, 0, 0, 1, 1, 2], [0], [0]>} : vector<1x8x8xf32>, vector<1x8x8xf32>, vector<1x8x8xf32> -> vector<1x8x8xf32>
    "tpu.trace_stop"() : () -> ()
    %54 = vector.extract_strided_slice %14 {offsets = [0, 0, 16], sizes = [1, 8, 8], strides = [1, 1, 1]} : vector<1x8x32xf32> to vector<1x8x8xf32>
    %55 = vector.extract_strided_slice %15 {offsets = [0, 0, 16], sizes = [1, 8, 8], strides = [1, 1, 1]} : vector<1x8x32xf32> to vector<1x8x8xf32>
    %56 = vector.extract_strided_slice %16 {offsets = [0, 0, 16], sizes = [1, 8, 8], strides = [1, 1, 1]} : vector<1x8x32xf32> to vector<1x8x8xf32>
    "tpu.trace_start"() <{level = 10 : i32, message = "bqd,bkd->bqk"}> : () -> ()
    %cst_30 = arith.constant dense<0.000000e+00> : vector<1x8x8xf32>
    %57 = tpu.matmul %54, %55, %cst_30 {dimension_numbers = #tpu.dot_dimension_numbers<[2], [2], [1], [1], [0, 0, 0, 1, 1, 1], [0], [0]>} : vector<1x8x8xf32>, vector<1x8x8xf32>, vector<1x8x8xf32> -> vector<1x8x8xf32>
    %cst_31 = arith.constant -1.000000e+20 : f32
    "tpu.trace_stop"() : () -> ()
    %58 = vector.broadcast %cst_31 : f32 to vector<1x8x8xf32>
    %59 = arith.select %19, %57, %58 : vector<1x8x8xi1>, vector<1x8x8xf32>
    %cst_32 = arith.constant dense<0xFF800000> : vector<1x8xf32>
    %60 = vector.multi_reduction <maximumf>, %59, %cst_32 [2] : vector<1x8x8xf32> to vector<1x8xf32>
    %61 = vector.shape_cast %60 : vector<1x8xf32> to vector<1x8x1xf32>
    %62 = vector.broadcast %61 : vector<1x8x1xf32> to vector<1x8x8xf32>
    %63 = arith.subf %59, %62 : vector<1x8x8xf32>
    %64 = math.exp %63 : vector<1x8x8xf32>
    %cst_33 = arith.constant dense<0.000000e+00> : vector<1x8xf32>
    %65 = vector.multi_reduction <add>, %64, %cst_33 [2] : vector<1x8x8xf32> to vector<1x8xf32>
    %66 = vector.shape_cast %65 : vector<1x8xf32> to vector<1x8x1xf32>
    %67 = tpu.reciprocal %66 {approx = true} : vector<1x8x1xf32> -> vector<1x8x1xf32>
    %68 = vector.broadcast %67 : vector<1x8x1xf32> to vector<1x8x8xf32>
    %69 = arith.mulf %64, %68 : vector<1x8x8xf32>
    "tpu.trace_start"() <{level = 10 : i32, message = "bqk,bkd->bqd"}> : () -> ()
    %cst_34 = arith.constant dense<0.000000e+00> : vector<1x8x8xf32>
    %70 = tpu.matmul %69, %56, %cst_34 {dimension_numbers = #tpu.dot_dimension_numbers<[2], [1], [1], [2], [0, 0, 0, 1, 1, 2], [0], [0]>} : vector<1x8x8xf32>, vector<1x8x8xf32>, vector<1x8x8xf32> -> vector<1x8x8xf32>
    "tpu.trace_stop"() : () -> ()
    %71 = vector.extract_strided_slice %14 {offsets = [0, 0, 24], sizes = [1, 8, 8], strides = [1, 1, 1]} : vector<1x8x32xf32> to vector<1x8x8xf32>
    %72 = vector.extract_strided_slice %15 {offsets = [0, 0, 24], sizes = [1, 8, 8], strides = [1, 1, 1]} : vector<1x8x32xf32> to vector<1x8x8xf32>
    %73 = vector.extract_strided_slice %16 {offsets = [0, 0, 24], sizes = [1, 8, 8], strides = [1, 1, 1]} : vector<1x8x32xf32> to vector<1x8x8xf32>
    "tpu.trace_start"() <{level = 10 : i32, message = "bqd,bkd->bqk"}> : () -> ()
    %cst_35 = arith.constant dense<0.000000e+00> : vector<1x8x8xf32>
    %74 = tpu.matmul %71, %72, %cst_35 {dimension_numbers = #tpu.dot_dimension_numbers<[2], [2], [1], [1], [0, 0, 0, 1, 1, 1], [0], [0]>} : vector<1x8x8xf32>, vector<1x8x8xf32>, vector<1x8x8xf32> -> vector<1x8x8xf32>
    %cst_36 = arith.constant -1.000000e+20 : f32
    "tpu.trace_stop"() : () -> ()
    %75 = vector.broadcast %cst_36 : f32 to vector<1x8x8xf32>
    %76 = arith.select %19, %74, %75 : vector<1x8x8xi1>, vector<1x8x8xf32>
    %cst_37 = arith.constant dense<0xFF800000> : vector<1x8xf32>
    %77 = vector.multi_reduction <maximumf>, %76, %cst_37 [2] : vector<1x8x8xf32> to vector<1x8xf32>
    %78 = vector.shape_cast %77 : vector<1x8xf32> to vector<1x8x1xf32>
    %79 = vector.broadcast %78 : vector<1x8x1xf32> to vector<1x8x8xf32>
    %80 = arith.subf %76, %79 : vector<1x8x8xf32>
    %81 = math.exp %80 : vector<1x8x8xf32>
    %cst_38 = arith.constant dense<0.000000e+00> : vector<1x8xf32>
    %82 = vector.multi_reduction <add>, %81, %cst_38 [2] : vector<1x8x8xf32> to vector<1x8xf32>
    %83 = vector.shape_cast %82 : vector<1x8xf32> to vector<1x8x1xf32>
    %84 = tpu.reciprocal %83 {approx = true} : vector<1x8x1xf32> -> vector<1x8x1xf32>
    %85 = vector.broadcast %84 : vector<1x8x1xf32> to vector<1x8x8xf32>
    %86 = arith.mulf %81, %85 : vector<1x8x8xf32>
    "tpu.trace_start"() <{level = 10 : i32, message = "bqk,bkd->bqd"}> : () -> ()
    %cst_39 = arith.constant dense<0.000000e+00> : vector<1x8x8xf32>
    %87 = tpu.matmul %86, %73, %cst_39 {dimension_numbers = #tpu.dot_dimension_numbers<[2], [1], [1], [2], [0, 0, 0, 1, 1, 2], [0], [0]>} : vector<1x8x8xf32>, vector<1x8x8xf32>, vector<1x8x8xf32> -> vector<1x8x8xf32>
    "tpu.trace_stop"() : () -> ()
    %88 = tpu.concatenate %36, %53, %70, %87 in 2 : vector<1x8x8xf32>, vector<1x8x8xf32>, vector<1x8x8xf32>, vector<1x8x8xf32> -> vector<1x8x32xf32>
    %89 = vector.shape_cast %88 : vector<1x8x32xf32> to vector<8x32xf32>
    %c0_40 = arith.constant 0 : index
    %c0_41 = arith.constant 0 : index
    %90 = vector.load %arg9[%c0_40, %c0_41] : memref<32x32xf32, #tpu.memory_space<vmem>>, vector<32x32xf32>
    %cst_42 = arith.constant dense<0.000000e+00> : vector<8x32xf32>
    %91 = tpu.matmul %89, %90, %cst_42 {dimension_numbers = #tpu.dot_dimension_numbers<[1], [0], [0], [1], [0, 0, 1, 1], [], []>} : vector<8x32xf32>, vector<32x32xf32>, vector<8x32xf32> -> vector<8x32xf32>
    %c0_43 = arith.constant 0 : index
    %c0_44 = arith.constant 0 : index
    %92 = vector.load %arg10[%c0_43, %c0_44] : memref<1x32xf32, #tpu.memory_space<vmem>>, vector<1x32xf32>
    %93 = vector.broadcast %92 : vector<1x32xf32> to vector<8x32xf32>
    %94 = arith.addf %91, %93 : vector<8x32xf32>
    %95 = arith.addf %1, %94 : vector<8x32xf32>
    %c0_45 = arith.constant 0 : index
    %c0_46 = arith.constant 0 : index
    %96 = vector.load %arg11[%c0_45, %c0_46] : memref<1x32xf32, #tpu.memory_space<vmem>>, vector<1x32xf32>
    %c0_47 = arith.constant 0 : index
    %c0_48 = arith.constant 0 : index
    %97 = vector.load %arg12[%c0_47, %c0_48] : memref<1x32xf32, #tpu.memory_space<vmem>>, vector<1x32xf32>
    %cst_49 = arith.constant dense<0.000000e+00> : vector<8xf32>
    %98 = vector.multi_reduction <add>, %95, %cst_49 [1] : vector<8x32xf32> to vector<8xf32>
    %99 = vector.shape_cast %98 : vector<8xf32> to vector<8x1xf32>
    %cst_50 = arith.constant 3.200000e+01 : f32
    %100 = vector.broadcast %cst_50 : f32 to vector<8x1xf32>
    %101 = arith.divf %99, %100 : vector<8x1xf32>
    %102 = vector.broadcast %101 : vector<8x1xf32> to vector<8x32xf32>
    %103 = arith.subf %95, %102 : vector<8x32xf32>
    %104 = arith.mulf %103, %103 : vector<8x32xf32>
    %cst_51 = arith.constant dense<0.000000e+00> : vector<8xf32>
    %105 = vector.multi_reduction <add>, %104, %cst_51 [1] : vector<8x32xf32> to vector<8xf32>
    %106 = vector.shape_cast %105 : vector<8xf32> to vector<8x1xf32>
    %cst_52 = arith.constant 3.200000e+01 : f32
    %107 = vector.broadcast %cst_52 : f32 to vector<8x1xf32>
    %108 = arith.divf %106, %107 : vector<8x1xf32>
    %109 = vector.broadcast %101 : vector<8x1xf32> to vector<8x32xf32>
    %110 = arith.subf %95, %109 : vector<8x32xf32>
    %cst_53 = arith.constant 9.99999974E-6 : f32
    %111 = vector.broadcast %cst_53 : f32 to vector<8x1xf32>
    %112 = arith.addf %108, %111 : vector<8x1xf32>
    %113 = math.rsqrt %112 : vector<8x1xf32>
    %114 = vector.broadcast %113 : vector<8x1xf32> to vector<8x32xf32>
    %115 = arith.mulf %110, %114 : vector<8x32xf32>
    %116 = vector.broadcast %96 : vector<1x32xf32> to vector<8x32xf32>
    %117 = arith.mulf %115, %116 : vector<8x32xf32>
    %118 = vector.broadcast %97 : vector<1x32xf32> to vector<8x32xf32>
    %119 = arith.addf %117, %118 : vector<8x32xf32>
    %c0_54 = arith.constant 0 : index
    %c0_55 = arith.constant 0 : index
    %120 = vector.load %arg13[%c0_54, %c0_55] : memref<32x128xf32, #tpu.memory_space<vmem>>, vector<32x128xf32>
    %cst_56 = arith.constant dense<0.000000e+00> : vector<8x128xf32>
    %121 = tpu.matmul %119, %120, %cst_56 {dimension_numbers = #tpu.dot_dimension_numbers<[1], [0], [0], [1], [0, 0, 1, 1], [], []>} : vector<8x32xf32>, vector<32x128xf32>, vector<8x128xf32> -> vector<8x128xf32>
    %c0_57 = arith.constant 0 : index
    %c0_58 = arith.constant 0 : index
    %122 = vector.load %arg14[%c0_57, %c0_58] : memref<1x128xf32, #tpu.memory_space<vmem>>, vector<1x128xf32>
    %123 = vector.broadcast %122 : vector<1x128xf32> to vector<8x128xf32>
    %124 = arith.addf %121, %123 : vector<8x128xf32>
    %cst_59 = arith.constant 0.000000e+00 : f32
    %125 = vector.broadcast %cst_59 : f32 to vector<8x128xf32>
    %126 = arith.maximumf %124, %125 : vector<8x128xf32>
    %c0_60 = arith.constant 0 : index
    %c0_61 = arith.constant 0 : index
    %127 = vector.load %arg15[%c0_60, %c0_61] : memref<128x32xf32, #tpu.memory_space<vmem>>, vector<128x32xf32>
    %cst_62 = arith.constant dense<0.000000e+00> : vector<8x32xf32>
    %128 = tpu.matmul %126, %127, %cst_62 {dimension_numbers = #tpu.dot_dimension_numbers<[1], [0], [0], [1], [0, 0, 1, 1], [], []>} : vector<8x128xf32>, vector<128x32xf32>, vector<8x32xf32> -> vector<8x32xf32>
    %c0_63 = arith.constant 0 : index
    %c0_64 = arith.constant 0 : index
    %129 = vector.load %arg16[%c0_63, %c0_64] : memref<1x32xf32, #tpu.memory_space<vmem>>, vector<1x32xf32>
    %130 = vector.broadcast %129 : vector<1x32xf32> to vector<8x32xf32>
    %131 = arith.addf %128, %130 : vector<8x32xf32>
    %132 = arith.addf %119, %131 : vector<8x32xf32>
    %c0_65 = arith.constant 0 : index
    %c0_66 = arith.constant 0 : index
    %133 = vector.load %arg17[%c0_65, %c0_66] : memref<1x32xf32, #tpu.memory_space<vmem>>, vector<1x32xf32>
    %c0_67 = arith.constant 0 : index
    %c0_68 = arith.constant 0 : index
    %134 = vector.load %arg18[%c0_67, %c0_68] : memref<1x32xf32, #tpu.memory_space<vmem>>, vector<1x32xf32>
    %cst_69 = arith.constant dense<0.000000e+00> : vector<8xf32>
    %135 = vector.multi_reduction <add>, %132, %cst_69 [1] : vector<8x32xf32> to vector<8xf32>
    %136 = vector.shape_cast %135 : vector<8xf32> to vector<8x1xf32>
    %cst_70 = arith.constant 3.200000e+01 : f32
    %137 = vector.broadcast %cst_70 : f32 to vector<8x1xf32>
    %138 = arith.divf %136, %137 : vector<8x1xf32>
    %139 = vector.broadcast %138 : vector<8x1xf32> to vector<8x32xf32>
    %140 = arith.subf %132, %139 : vector<8x32xf32>
    %141 = arith.mulf %140, %140 : vector<8x32xf32>
    %cst_71 = arith.constant dense<0.000000e+00> : vector<8xf32>
    %142 = vector.multi_reduction <add>, %141, %cst_71 [1] : vector<8x32xf32> to vector<8xf32>
    %143 = vector.shape_cast %142 : vector<8xf32> to vector<8x1xf32>
    %cst_72 = arith.constant 3.200000e+01 : f32
    %144 = vector.broadcast %cst_72 : f32 to vector<8x1xf32>
    %145 = arith.divf %143, %144 : vector<8x1xf32>
    %146 = vector.broadcast %138 : vector<8x1xf32> to vector<8x32xf32>
    %147 = arith.subf %132, %146 : vector<8x32xf32>
    %cst_73 = arith.constant 9.99999974E-6 : f32
    %148 = vector.broadcast %cst_73 : f32 to vector<8x1xf32>
    %149 = arith.addf %145, %148 : vector<8x1xf32>
    %150 = math.rsqrt %149 : vector<8x1xf32>
    %151 = vector.broadcast %150 : vector<8x1xf32> to vector<8x32xf32>
    %152 = arith.mulf %147, %151 : vector<8x32xf32>
    %153 = vector.broadcast %133 : vector<1x32xf32> to vector<8x32xf32>
    %154 = arith.mulf %152, %153 : vector<8x32xf32>
    %155 = vector.broadcast %134 : vector<1x32xf32> to vector<8x32xf32>
    %156 = arith.addf %154, %155 : vector<8x32xf32>
    %157 = vector.shape_cast %156 : vector<8x32xf32> to vector<1x8x32xf32>
    %c0_74 = arith.constant 0 : index
    %c0_75 = arith.constant 0 : index
    %c0_76 = arith.constant 0 : index
    %158 = vector.load %arg19[%c0_74, %c0_75, %c0_76] : memref<1x8x32xf32, #tpu.memory_space<vmem>>, vector<1x8x32xf32>
    tpu.vector_store %arg19[%c0_74, %c0_75, %c0_76], %157 {strides = array<i32>} : memref<1x8x32xf32, #tpu.memory_space<vmem>>, vector<1x8x32xf32>,
    return
  }
  func.func @transform_0(%arg0: i32, %arg1: i32) -> (i32, i32, i32) {
    %c0_i32 = arith.constant 0 : i32
    %c0_i32_0 = arith.constant 0 : i32
    return %arg0, %arg1, %c0_i32 : i32, i32, i32
  }
  func.func @transform_1(%arg0: i32, %arg1: i32) -> (i32, i32, i32) {
    %c0_i32 = arith.constant 0 : i32
    %c0_i32_0 = arith.constant 0 : i32
    %c0_i32_1 = arith.constant 0 : i32
    return %arg0, %c0_i32, %c0_i32_0 : i32, i32, i32
  }
  func.func @transform_2(%arg0: i32, %arg1: i32) -> (i32, i32, i32) {
    %c0_i32 = arith.constant 0 : i32
    %c0_i32_0 = arith.constant 0 : i32
    %c0_i32_1 = arith.constant 0 : i32
    return %arg0, %c0_i32, %c0_i32_0 : i32, i32, i32
  }
  func.func @transform_3(%arg0: i32, %arg1: i32) -> (i32, i32, i32) {
    %c0_i32 = arith.constant 0 : i32
    %c0_i32_0 = arith.constant 0 : i32
    return %arg0, %arg1, %c0_i32 : i32, i32, i32
  }
  func.func @transform_4(%arg0: i32, %arg1: i32) -> (i32, i32) {
    %c0_i32 = arith.constant 0 : i32
    %c0_i32_0 = arith.constant 0 : i32
    %c0_i32_1 = arith.constant 0 : i32
    return %c0_i32, %c0_i32_0 : i32, i32
  }
  func.func @transform_5(%arg0: i32, %arg1: i32) -> (i32, i32) {
    %c0_i32 = arith.constant 0 : i32
    %c0_i32_0 = arith.constant 0 : i32
    %c0_i32_1 = arith.constant 0 : i32
    return %c0_i32, %c0_i32_0 : i32, i32
  }
  func.func @transform_6(%arg0: i32, %arg1: i32) -> (i32, i32) {
    %c0_i32 = arith.constant 0 : i32
    %c0_i32_0 = arith.constant 0 : i32
    %c0_i32_1 = arith.constant 0 : i32
    return %c0_i32, %c0_i32_0 : i32, i32
  }
  func.func @transform_7(%arg0: i32, %arg1: i32) -> (i32, i32) {
    %c0_i32 = arith.constant 0 : i32
    %c0_i32_0 = arith.constant 0 : i32
    %c0_i32_1 = arith.constant 0 : i32
    return %c0_i32, %c0_i32_0 : i32, i32
  }
  func.func @transform_8(%arg0: i32, %arg1: i32) -> (i32, i32) {
    %c0_i32 = arith.constant 0 : i32
    %c0_i32_0 = arith.constant 0 : i32
    %c0_i32_1 = arith.constant 0 : i32
    return %c0_i32, %c0_i32_0 : i32, i32
  }
  func.func @transform_9(%arg0: i32, %arg1: i32) -> (i32, i32) {
    %c0_i32 = arith.constant 0 : i32
    %c0_i32_0 = arith.constant 0 : i32
    %c0_i32_1 = arith.constant 0 : i32
    return %c0_i32, %c0_i32_0 : i32, i32
  }
  func.func @transform_10(%arg0: i32, %arg1: i32) -> (i32, i32) {
    %c0_i32 = arith.constant 0 : i32
    %c0_i32_0 = arith.constant 0 : i32
    %c0_i32_1 = arith.constant 0 : i32
    return %c0_i32, %c0_i32_0 : i32, i32
  }
  func.func @transform_11(%arg0: i32, %arg1: i32) -> (i32, i32) {
    %c0_i32 = arith.constant 0 : i32
    %c0_i32_0 = arith.constant 0 : i32
    %c0_i32_1 = arith.constant 0 : i32
    return %c0_i32, %c0_i32_0 : i32, i32
  }
  func.func @transform_12(%arg0: i32, %arg1: i32) -> (i32, i32) {
    %c0_i32 = arith.constant 0 : i32
    %c0_i32_0 = arith.constant 0 : i32
    %c0_i32_1 = arith.constant 0 : i32
    return %c0_i32, %c0_i32_0 : i32, i32
  }
  func.func @transform_13(%arg0: i32, %arg1: i32) -> (i32, i32) {
    %c0_i32 = arith.constant 0 : i32
    %c0_i32_0 = arith.constant 0 : i32
    %c0_i32_1 = arith.constant 0 : i32
    return %c0_i32, %c0_i32_0 : i32, i32
  }
  func.func @transform_14(%arg0: i32, %arg1: i32) -> (i32, i32) {
    %c0_i32 = arith.constant 0 : i32
    %c0_i32_0 = arith.constant 0 : i32
    %c0_i32_1 = arith.constant 0 : i32
    return %c0_i32, %c0_i32_0 : i32, i32
  }
  func.func @transform_15(%arg0: i32, %arg1: i32) -> (i32, i32) {
    %c0_i32 = arith.constant 0 : i32
    %c0_i32_0 = arith.constant 0 : i32
    %c0_i32_1 = arith.constant 0 : i32
    return %c0_i32, %c0_i32_0 : i32, i32
  }
  func.func @transform_16(%arg0: i32, %arg1: i32) -> (i32, i32) {
    %c0_i32 = arith.constant 0 : i32
    %c0_i32_0 = arith.constant 0 : i32
    %c0_i32_1 = arith.constant 0 : i32
    return %c0_i32, %c0_i32_0 : i32, i32
  }
  func.func @transform_17(%arg0: i32, %arg1: i32) -> (i32, i32, i32) {
    %c0_i32 = arith.constant 0 : i32
    %c0_i32_0 = arith.constant 0 : i32
    return %arg0, %arg1, %c0_i32 : i32, i32, i32
  }
}

</mosaic_0001>

<bundles_post_ra>
// kernel: tpu_custom_call.1
= control target key start
LH: loop header
LB: loop body
LE: loop exit
PB: predicated region body
PF: predicated region fallthrough
CT: control target
= control target key end

     0   :  { %s4407_s0 = inlined_call_operand.hbm [shape: f32[2,8,32], index: 0, kind: input, shape index: {}]   ;;  %s4408_s1 = inlined_call_operand.hbm [shape: f32[2,8,32], index: 1, kind: input, shape index: {}]   ;;  %s4409_s2 = inlined_call_operand.hbm [shape: f32[2,8,32], index: 2, kind: input, shape index: {}]   ;;  %s4410_s3 = inlined_call_operand.hbm [shape: s8[2,8,8], index: 3, kind: input, shape index: {}]   ;;  %s4411_s4 = inlined_call_operand.hbm [shape: f32[32,32], index: 4, kind: input, shape index: {}]   ;;  %s4412_s5 = inlined_call_operand.hbm [shape: f32[32,32], index: 5, kind: input, shape index: {}]   ;;  %s4413_s6 = inlined_call_operand.hbm [shape: f32[32,32], index: 6, kind: input, shape index: {}]   ;;  %s4414_s7 = inlined_call_operand.hbm [shape: f32[32,32], index: 7, kind: input, shape index: {}]   ;;  %s4415_s8 = inlined_call_operand.hbm [shape: f32[1,32], index: 8, kind: input, shape index: {}]   ;;  %s4416_s9 = inlined_call_operand.hbm [shape: f32[1,32], index: 9, kind: input, shape index: {}]   ;;  %s4417_s10 = inlined_call_operand.hbm [shape: f32[1,32], index: 10, kind: input, shape index: {}]   ;;  %s4418_s11 = inlined_call_operand.hbm [shape: f32[32,128], index: 11, kind: input, shape index: {}]   ;;  %s4419_s12 = inlined_call_operand.hbm [shape: f32[1,128], index: 12, kind: input, shape index: {}]   ;;  %s4420_s13 = inlined_call_operand.hbm [shape: f32[128,32], index: 13, kind: input, shape index: {}]   ;;  %s4421_s14 = inlined_call_operand.hbm [shape: f32[1,32], index: 14, kind: input, shape index: {}]   ;;  %s4422_s15 = inlined_call_operand.hbm [shape: f32[1,32], index: 15, kind: input, shape index: {}]   ;;  %s4423_s16 = inlined_call_operand.hbm [shape: f32[1,32], index: 16, kind: input, shape index: {}]   ;;  %s4424_s17 = inlined_call_operand.hbm [shape: f32[2,8,32], index: 17, kind: output, shape index: {}]  }
   0x1   :  { %4455 = sst [smem:[#allocation46_spill]] %s4407_s0 }
   0x2   :  { %4456 = sst [smem:[#allocation47_spill]] %s4408_s1 }
   0x3   :  { %4457 = sst [smem:[#allocation48_spill]] %s4409_s2 }
   0x4   :  { %4458 = sst [smem:[#allocation49_spill]] %s4410_s3 }
   0x5   :  { %4459 = sst [smem:[#allocation50_spill]] %s4411_s4 }
   0x6   :  { %4460 = sst [smem:[#allocation51_spill]] %s4412_s5 }
   0x7   :  { %4461 = sst [smem:[#allocation52_spill]] %s4413_s6 }
   0x8   :  { %4462 = sst [smem:[#allocation53_spill]] %s4414_s7 }
   0x9   :  { %4463 = sst [smem:[#allocation54_spill]] %s4415_s8 }
   0xa   :  { %4464 = sst [smem:[#allocation55_spill]] %s4416_s9 }
   0xb   :  { %4465 = sst [smem:[#allocation56_spill]] %s4417_s10 }
   0xc   :  { %4466 = sst [smem:[#allocation57_spill]] %s4418_s11 }
   0xd   :  { %4467 = sst [smem:[#allocation58_spill]] %s4419_s12 }
   0xe   :  { %4468 = sst [smem:[#allocation59_spill]] %s4420_s13 }
   0xf   :  { %4469 = sst [smem:[#allocation60_spill]] %s4421_s14 }
  0x10   :  { %4470 = sst [smem:[#allocation61_spill]] %s4422_s15 }
  0x11   :  { %4471 = sst [smem:[#allocation62_spill]] %s4423_s16 }
  0x12   :  { %4472 = sst [smem:[#allocation63_spill]] %s4424_s17 }
  0x13   :  { %22 = vsyncpa [#allocation3], 0 }
  0x14   :  { %24 = vsyncpa [#allocation3 + $0x1], 0 }
  0x15   :  { %25 = vsyncpa [#allocation6], 0 }
  0x16   :  { %27 = vsyncpa [#allocation6 + $0x1], 0 }
  0x17   :  { %28 = vsyncpa [#allocation9], 0 }
  0x18   :  { %30 = vsyncpa [#allocation9 + $0x1], 0 }
  0x19   :  { %31 = vsyncpa [#allocation12], 0 }
  0x1a   :  { %32 = vsyncpa [#allocation15], 0 }
  0x1b   :  { %33 = vsyncpa [#allocation18], 0 }
  0x1c   :  { %34 = vsyncpa [#allocation21], 0 }
  0x1d   :  { %35 = vsyncpa [#allocation24], 0 }
  0x1e   :  { %36 = vsyncpa [#allocation27], 0 }
  0x1f   :  { %37 = vsyncpa [#allocation4], 0 }
  0x20   :  { %39 = vsyncpa [#allocation4 + $0x1], 0  ;;  %s3674_s24 = smov 0   ;;  %s3676_s25 = smov 0  }
  0x21   :  { %s3678_s26 = smov 0   ;;  %s3680_s27 = smov 0  }
  0x22   :  { %s3682_s28 = smov 0   ;;  %s3684_s29 = smov 0  }
  0x23 LB: > { %4473 = sst [smem:[#allocation41_spill]] %s3540_s26  ;;  %s3705_s0 = sadd.s32 4294967295, %s3552_s29   ;;  %s3552_s29 = sphi %s3684_s29, %s45_s29   ;;  %s3548_s28 = sphi %s3682_s28, %s4544_s28   ;;  %s3544_s27 = sphi %s3680_s27, %s4543_s27   ;;  %s3540_s26 = sphi %s3678_s26, %s4539_s26   ;;  %s3536_s25 = sphi %s3676_s25, %s4542_s25   ;;  %s3532_s24 = sphi %s3674_s24, %s4541_s24  }
  0x24   : > { %4474 = sst [smem:[#allocation42_spill]] %s3544_s27  ;;  %p2398_p0 = scmp.ge.s32.totalorder %s3552_s29, 1 }
  0x25   : > { %p4435_p1 = scmp.eq.s32.totalorder %s3705_s0, 0  ;;  %p471_p2 = scmp.lt.s32.totalorder %s3552_s29, 3 }
  0x26   : > { %s3554_s18 = smov [#allocation10]   ;;  %s3555_s20 = smov [#allocation11]  }
  0x27   : > { %p3710_p3 = pnand %p2398_p0, %p471_p2  ;;  %s483_s19 = sshll.u32 %s3554_s18, 4  ;;  %s3714_s19 = int_to_ptr.vmem [resolvable:$true] %s483_s19 }
  0x28   : > { %s496_s21 = sshll.u32 %s3555_s20, 4  ;;  %s3556_s22 = smov [#allocation14]   ;;  %s3725_s21 = int_to_ptr.vmem [resolvable:$true] %s496_s21 }
  0x29   : > { %s4475_s30 = scalar_select %p3710_p3, 1, 0 }
  0x2a   : > { %p2772_p4 = pneg %p3710_p3  ;;  %s3727_s23 = sshll.u32 %s3556_s22, 4  ;;  %s523_s23 = int_to_ptr.vmem [resolvable:$true] %s3727_s23 }
  0x2b   : > { %4476 = sst [smem:[#allocation43_spill]] %s4475_s30  ;;  %s4478_s4 = sld [smem:[#allocation50_spill]] }
  0x2c   : > { %p3721_p6 = pnand %p2772_p4, %p4435_p1 }
  0x2e   : > { %s4477_s1 = scalar_select %p3721_p6, 1, 0 }
  0x2f   : > { %p3737_p8 = pneg %p3721_p6 }
  0x31   : > { %s2950_s27 = scalar_lea.hbm %s4478_s4, 512 }
  0x32   : > { %p2951_p7 = scmp.ne.s32.totalorder %s4478_s4, %s2950_s27  ;;  %p2957_p11 = scmp.lt.u32.totalorder %s2950_s27, %s4478_s4 }
  0x33   : > { %s4479_s2 = scalar_select %p3737_p8, 1, 0 }
  0x34   : > { %p2953_p9 = pnand %p3737_p8, %p2951_p7 }
  0x36   : > { %p2954_p10 = pneg %p2953_p9 }
  0x38   : > { %p2959_p12 = pnand %p2957_p11, %p2954_p10 }
  0x3a   : > { %2962 = shalt.err (!%p2959_p12)
}
  0x3b   : > { %s2963_s3 = scalar_lea.vmem %s3714_s19, 512  ;;  %p2971_p4 = scmp.lt.s32.totalorder %s3714_s19, %s3714_s19 }
  0x3c   : > { %p2964_p13 = scmp.ne.s32.totalorder %s3714_s19, %s2963_s3  ;;  %p2972_p5 = scmp.lt.s32.totalorder %s2963_s3, %s2963_s3 }
  0x3e   : > { %p2966_p0 = pnand %p2964_p13, %p3737_p8  ;;  %p2973_p7 = por %p2972_p5, %p2971_p4 }
  0x40   : > { %p2967_p2 = pneg %p2966_p0 }
  0x42   : > { %p2974_p9 = pnand %p2973_p7, %p2967_p2 }
  0x44   : > { %2977 = shalt.err (!%p2974_p9)
}
  0x45   : > { %s4437_s17 = smov 128   ;;  %s4438_s27 = smov 8  }
  0x46   : > { %2775 = dma.hbm_to_vmem [thread:$0]  (!%p3721_p6), %s4478_s4, 512, %s3714_s19, [#allocation9], %s4437_s17, %s4437_s17, %s4438_s27  }
  0x47   : > { %s4480_s5 = sld [smem:[#allocation51_spill]] }
  0x4d   : > { %s2978_s3 = scalar_lea.hbm %s4480_s5, 512 }
  0x4e   : > { %p2979_p5 = scmp.ne.s32.totalorder %s4480_s5, %s2978_s3  ;;  %p2985_p12 = scmp.lt.u32.totalorder %s2978_s3, %s4480_s5 }
  0x50   : > { %p2981_p10 = pnand %p2979_p5, %p3737_p8 }
  0x52   : > { %p2982_p11 = pneg %p2981_p10 }
  0x54   : > { %p2987_p13 = pnand %p2985_p12, %p2982_p11 }
  0x56   : > { %2990 = shalt.err (!%p2987_p13)
}
  0x57   : > { %s2991_s19 = scalar_lea.vmem %s3725_s21, 512  ;;  %p2999_p7 = scmp.lt.s32.totalorder %s3725_s21, %s3725_s21 }
  0x58   : > { %p2992_p0 = scmp.ne.s32.totalorder %s3725_s21, %s2991_s19  ;;  %p3000_p9 = scmp.lt.s32.totalorder %s2991_s19, %s2991_s19 }
  0x5a   : > { %p2994_p2 = pnand %p2992_p0, %p3737_p8  ;;  %p3001_p5 = por %p3000_p9, %p2999_p7 }
  0x5c   : > { %p2995_p4 = pneg %p2994_p2 }
  0x5e   : > { %p3002_p10 = pnand %p3001_p5, %p2995_p4 }
  0x60   : > { %3005 = shalt.err (!%p3002_p10)
}
  0x61   : > { %2778 = dma.hbm_to_vmem [thread:$0]  (!%p3721_p6), %s4480_s5, 512, %s3725_s21, [#allocation12], %s4437_s17, %s4437_s17, %s4438_s27  }
  0x62   : > { %s4481_s7 = sld [smem:[#allocation53_spill]] }
  0x68   : > { %s3006_s30 = scalar_lea.hbm %s4481_s7, 512 }
  0x69   : > { %p3007_p11 = scmp.ne.s32.totalorder %s4481_s7, %s3006_s30  ;;  %p3013_p0 = scmp.lt.u32.totalorder %s3006_s30, %s4481_s7 }
  0x6b   : > { %p3009_p12 = pnand %p3007_p11, %p3737_p8 }
  0x6d   : > { %p3010_p13 = pneg %p3009_p12 }
  0x6f   : > { %p3015_p2 = pnand %p3013_p0, %p3010_p13 }
  0x71   : > { %3018 = shalt.err (!%p3015_p2)
}
  0x72   : > { %s3019_s19 = scalar_lea.vmem %s523_s23, 512  ;;  %p3027_p5 = scmp.lt.s32.totalorder %s523_s23, %s523_s23 }
  0x73   : > { %p3020_p4 = scmp.ne.s32.totalorder %s523_s23, %s3019_s19  ;;  %p3028_p10 = scmp.lt.s32.totalorder %s3019_s19, %s3019_s19 }
  0x75   : > { %p3022_p7 = pnand %p3020_p4, %p3737_p8  ;;  %p3029_p1 = por %p3028_p10, %p3027_p5 }
  0x77   : > { %p3023_p9 = pneg %p3022_p7 }
  0x79   : > { %p3030_p3 = pnand %p3029_p1, %p3023_p9 }
  0x7b   : > { %3033 = shalt.err (!%p3030_p3)
}
  0x7c   : > { %2784 = dma.hbm_to_vmem [thread:$0]  (!%p3721_p6), %s4481_s7, 512, %s523_s23, [#allocation15], %s4437_s17, %s4437_s17, %s4438_s27  }
  0x7d   : > { %s3559_s12 = smov [#allocation17]   ;;  %s3560_s16 = smov [#allocation20]  }
  0x7e   : > { %s547_s14 = sshll.u32 %s3559_s12, 4  ;;  %s568_s30 = sshll.u32 %s3560_s16, 4  ;;  %s548_s14 = int_to_ptr.vmem [resolvable:$true] %s547_s14  ;;  %s569_s30 = int_to_ptr.vmem [resolvable:$true] %s568_s30 }
  0x7f   : > { %s4482_s9 = sld [smem:[#allocation55_spill]] }
  0x85   : > { %s3034_s22 = scalar_lea.hbm %s4482_s9, 16 }
  0x86   : > { %p3035_p1 = scmp.ne.s32.totalorder %s4482_s9, %s3034_s22  ;;  %p3041_p12 = scmp.lt.u32.totalorder %s3034_s22, %s4482_s9 }
  0x88   : > { %p3037_p3 = pnand %p3035_p1, %p3737_p8 }
  0x8a   : > { %p3038_p11 = pneg %p3037_p3 }
  0x8c   : > { %p3043_p13 = pnand %p3041_p12, %p3038_p11 }
  0x8e   : > { %3046 = shalt.err (!%p3043_p13)
}
  0x8f   : > { %s3047_s23 = scalar_lea.vmem %s548_s14, 16  ;;  %s3054_s10 = scalar_lea.vmem %s548_s14, 32 }
  0x90   : > { %p3048_p0 = scmp.ne.s32.totalorder %s548_s14, %s3047_s23  ;;  %p3055_p7 = scmp.lt.s32.totalorder %s548_s14, %s548_s14 }
  0x91   : > { %p3056_p9 = scmp.lt.s32.totalorder %s3054_s10, %s3047_s23 }
  0x92   : > { %p3050_p2 = pnand %p3048_p0, %p3737_p8 }
  0x93   : > { %p3057_p5 = por %p3056_p9, %p3055_p7 }
  0x94   : > { %p3051_p4 = pneg %p3050_p2 }
  0x96   : > { %p3058_p10 = pnand %p3057_p5, %p3051_p4 }
  0x98   : > { %3061 = shalt.err (!%p3058_p10)
}
  0x99   : > { %2790 = dma.hbm_to_vmem [thread:$0]  (!%p3721_p6), %s4482_s9, 16, %s548_s14, [#allocation18]  }
  0x9a   : > { %s4483_s11 = sld [smem:[#allocation57_spill]] }
  0xa0   : > { %s3062_s20 = scalar_lea.hbm %s4483_s11, 512 }
  0xa1   : > { %p3063_p1 = scmp.ne.s32.totalorder %s4483_s11, %s3062_s20  ;;  %p3069_p12 = scmp.lt.u32.totalorder %s3062_s20, %s4483_s11 }
  0xa3   : > { %p3065_p3 = pnand %p3063_p1, %p3737_p8 }
  0xa5   : > { %p3066_p11 = pneg %p3065_p3 }
  0xa7   : > { %p3071_p13 = pnand %p3069_p12, %p3066_p11 }
  0xa9   : > { %3074 = shalt.err (!%p3071_p13)
}
  0xaa   : > { %s3075_s23 = scalar_lea.vmem %s569_s30, 512  ;;  %p3083_p7 = scmp.lt.s32.totalorder %s569_s30, %s569_s30 }
  0xab   : > { %p3076_p0 = scmp.ne.s32.totalorder %s569_s30, %s3075_s23  ;;  %p3084_p9 = scmp.lt.s32.totalorder %s3075_s23, %s3075_s23 }
  0xad   : > { %p3078_p2 = pnand %p3076_p0, %p3737_p8  ;;  %p3085_p5 = por %p3084_p9, %p3083_p7 }
  0xaf   : > { %p3079_p4 = pneg %p3078_p2 }
  0xb1   : > { %p3086_p10 = pnand %p3085_p5, %p3079_p4 }
  0xb3   : > { %3089 = shalt.err (!%p3086_p10)
}
  0xb4   : > { %2796 = dma.hbm_to_vmem [thread:$0]  (!%p3721_p6), %s4483_s11, 512, %s569_s30, [#allocation21], %s4437_s17, %s4437_s17, %s4438_s27  }
  0xb5   : > { %s3561_s12 = smov [#allocation23]   ;;  %s3562_s4 = smov [#allocation26]  }
  0xb6   : > { %s592_s16 = sshll.u32 %s3561_s12, 4  ;;  %s617_s18 = sshll.u32 %s3562_s4, 4  ;;  %s593_s16 = int_to_ptr.vmem [resolvable:$true] %s592_s16  ;;  %s618_s18 = int_to_ptr.vmem [resolvable:$true] %s617_s18 }
  0xb7   : > { %s4484_s13 = sld [smem:[#allocation59_spill]] }
  0xbd   : > { %s3090_s3 = scalar_lea.hbm %s4484_s13, 2048 }
  0xbe   : > { %p3091_p1 = scmp.ne.s32.totalorder %s4484_s13, %s3090_s3  ;;  %p3097_p12 = scmp.lt.u32.totalorder %s3090_s3, %s4484_s13 }
  0xc0   : > { %p3093_p3 = pnand %p3091_p1, %p3737_p8 }
  0xc2   : > { %p3094_p11 = pneg %p3093_p3 }
  0xc4   : > { %p3099_p13 = pnand %p3097_p12, %p3094_p11 }
  0xc6   : > { %3102 = shalt.err (!%p3099_p13)
}
  0xc7   : > { %s3103_s30 = scalar_lea.vmem %s593_s16, 2048  ;;  %p3111_p7 = scmp.lt.s32.totalorder %s593_s16, %s593_s16 }
  0xc8   : > { %p3104_p0 = scmp.ne.s32.totalorder %s593_s16, %s3103_s30  ;;  %p3112_p9 = scmp.lt.s32.totalorder %s3103_s30, %s3103_s30 }
  0xca   : > { %p3106_p2 = pnand %p3104_p0, %p3737_p8  ;;  %p3113_p5 = por %p3112_p9, %p3111_p7 }
  0xcc   : > { %p3107_p4 = pneg %p3106_p2 }
  0xce   : > { %p3114_p10 = pnand %p3113_p5, %p3107_p4 }
  0xd0   : > { %3117 = shalt.err (!%p3114_p10)
}
  0xd1   : > { %2802 = dma.hbm_to_vmem [thread:$0]  (!%p3721_p6), %s4484_s13, 2048, %s593_s16, [#allocation24], %s4437_s17, %s4437_s17, %s4438_s27  }
  0xd2   : > { %s4485_s15 = sld [smem:[#allocation61_spill]] }
  0xd8   : > { %s3118_s22 = scalar_lea.hbm %s4485_s15, 16 }
  0xd9   : > { %p3119_p1 = scmp.ne.s32.totalorder %s4485_s15, %s3118_s22  ;;  %p3125_p12 = scmp.lt.u32.totalorder %s3118_s22, %s4485_s15 }
  0xdb   : > { %p3121_p3 = pnand %p3119_p1, %p3737_p8 }
  0xdd   : > { %p3122_p11 = pneg %p3121_p3 }
  0xdf   : > { %p3127_p13 = pnand %p3125_p12, %p3122_p11 }
  0xe1   : > { %3130 = shalt.err (!%p3127_p13)
}
  0xe2   : > { %s3131_s14 = scalar_lea.vmem %s618_s18, 16  ;;  %s3138_s16 = scalar_lea.vmem %s618_s18, 32 }
  0xe3   : > { %p3132_p0 = scmp.ne.s32.totalorder %s618_s18, %s3131_s14  ;;  %p3139_p7 = scmp.lt.s32.totalorder %s618_s18, %s618_s18 }
  0xe4   : > { %p3140_p9 = scmp.lt.s32.totalorder %s3138_s16, %s3131_s14 }
  0xe5   : > { %p3134_p2 = pnand %p3132_p0, %p3737_p8 }
  0xe6   : > { %p3141_p5 = por %p3140_p9, %p3139_p7 }
  0xe7   : > { %p3135_p4 = pneg %p3134_p2 }
  0xe9   : > { %p3142_p10 = pnand %p3141_p5, %p3135_p4 }
  0xeb   : > { %3145 = shalt.err (!%p3142_p10)
}
  0xec   : > { %2808 = dma.hbm_to_vmem [thread:$0]  (!%p3721_p6), %s4485_s15, 16, %s618_s18, [#allocation27]  }
  0xed   : > { %s2397_s12 = sadd.s32 4294967294, %s3552_s29   ;;  %s57_s4 = sadd.s32 1, %s3548_s28 }
  0xee   : > { %s66_s20 = sadd.s32 1, %s3540_s26  ;;  %p59_p1 = scmp.ge.s32.totalorder %s57_s4, 2 }
  0xef   : > { %p73_p3 = scmp.ne.s32.totalorder %s3540_s26, %s3536_s25  ;;  %p74_p11 = scmp.eq.s32.totalorder %s3552_s29, 0 }
  0xf0   : > { %p79_p12 = scmp.ne.s32.totalorder %s3536_s25, %s3532_s24  ;;  %s4546_s4 = smov (%p59_p1, %s57_s4), 0 }
  0xf1   : > { %4486 = sst [smem:[#allocation44_spill]] %s4546_s4  ;;  %p3897_p13 = por %p74_p11, %p73_p3 }
  0xf2   : > { %p4488_p0 = scmp.eq.s32.totalorder %s3705_s0, 0  ;;  %s61_s3 = ssub.s32 %s3548_s28, %s4546_s4 }
  0xf3   : > { %p458_p4 = scmp.eq.s32.totalorder %s3705_s0, 1  ;;  %p64_p7 = scmp.eq.s32.totalorder %s61_s3, 0 }
  0xf4   : > { %p3903_p2 = por %p4488_p0, %p79_p12  ;;  %p464_p9 = scmp.eq.s32.totalorder %s2397_s12, 1 }
  0xf5   : > { %p3910_p5 = por %p458_p4, %p73_p3  ;;  %p2842_p10 = scmp.lt.s32.totalorder %s3552_s29, 2 }
  0xf6   : > { %s4489_s18 = scalar_select %p3903_p2, 1, 0 }
  0xf7   : > { %s4490_s19 = scalar_select %p3910_p5, 1, 0 }
  0xf8   : > { %s3916_s21 = scalar_select %p64_p7, %s3540_s26, %s66_s20  }
  0xf9   : > { %p3918_p1 = por %p464_p9, %p79_p12  ;;  %s3923_s14 = sand.u32 1, %s3540_s26  }
  0xfa   : > { %4491 = sst [smem:[#allocation45_spill]] %s3916_s21  ;;  %s3926_s16 = sshll.u32 %s3923_s14, 3 }
  0xfb   : > { %s4492_s23 = scalar_select %p3918_p1, 1, 0 }
  0xfc   : > { %s3929_s30 = sshll.u32 %s3548_s28, 7  ;;  %p3933_p3 = pnand %p2842_p10, %p3897_p13 }
  0xfd   : > { %s4440_s12 = sand.u32 1, %s3552_s29   ;;  %s4494_s17 = sld [smem:[#allocation47_spill]] }
  0xfe   : > { %s4493_s10 = scalar_select %p3933_p3, 1, 0 }
  0xff   : > { %s662_s5 = scalar_lea.vmem [#allocation5], %s3926_s16  ;;  %s3949_s22 = scalar_lea.sflag [#allocation6], %s4440_s12 }
 0x100   : > { %s669_s7 = sshll.u32 %s662_s5, 4  ;;  %p3955_p12 = pneg %p3933_p3  ;;  %s3945_s7 = int_to_ptr.vmem [resolvable:$true] %s669_s7 }
 0x102   : > { %s4495_s11 = scalar_select %p3955_p12, 1, 0 }
 0x103   : > { %s3942_s27 = scalar_lea.hbm %s4494_s17, %s3929_s30  ;;  %s3151_s5 = scalar_lea.hbm %s4494_s17, 256 }
 0x104   : > { %s3146_s9 = scalar_lea.hbm %s3942_s27, 128  ;;  %p3152_p4 = scmp.lt.u32.totalorder %s3942_s27, %s4494_s17 }
 0x105   : > { %p3147_p11 = scmp.ne.s32.totalorder %s3942_s27, %s3146_s9  ;;  %p3153_p7 = scmp.lt.u32.totalorder %s3151_s5, %s3146_s9 }
 0x106   : > { %p3155_p10 = scmp.lt.u32.totalorder %s3146_s9, %s3942_s27 }
 0x107   : > { %p3149_p13 = pnand %p3955_p12, %p3147_p11  ;;  %p3154_p9 = por %p3153_p7, %p3152_p4 }
 0x109   : > { %p3150_p0 = pneg %p3149_p13  ;;  %p3156_p1 = por %p3155_p10, %p3154_p9 }
 0x10b   : > { %p3157_p5 = pnand %p3156_p1, %p3150_p0 }
 0x10d   : > { %3160 = shalt.err (!%p3157_p5)
}
 0x10e   : > { %s3161_s12 = scalar_lea.vmem %s3945_s7, 128  ;;  %s3563_s20 = smov [#allocation5]  }
 0x10f   : > { %p3162_p11 = scmp.ne.s32.totalorder %s3945_s7, %s3161_s12  ;;  %s3166_s3 = sshll.u32 %s3563_s20, 4  ;;  %s3167_s3 = int_to_ptr.vmem [resolvable:$false] %s3166_s3 }
 0x110   : > { %s3168_s13 = scalar_lea.vmem %s3167_s3, 256  ;;  %p3169_p6 = scmp.lt.s32.totalorder %s3945_s7, %s3167_s3 }
 0x111   : > { %p3164_p13 = pnand %p3162_p11, %p3955_p12  ;;  %p3170_p8 = scmp.lt.s32.totalorder %s3168_s13, %s3161_s12 }
 0x113   : > { %p3165_p2 = pneg %p3164_p13  ;;  %p3171_p4 = por %p3170_p8, %p3169_p6 }
 0x115   : > { %p3172_p7 = pnand %p3171_p4, %p3165_p2 }
 0x117   : > { %3175 = shalt.err (!%p3172_p7)
}
 0x118   : > { %2818 = dma.hbm_to_vmem [thread:$0]  (!%p3933_p3), %s3942_s27, 128, %s3945_s7, %s3949_s22  }
 0x119   : > { %s3564_s9 = smov [#allocation13]   ;;  %s3565_s5 = smov [#allocation16]  }
 0x11a   : > { %s509_s15 = sshll.u32 %s3564_s9, 4  ;;  %s536_s17 = sshll.u32 %s3565_s5, 4  ;;  %s510_s15 = int_to_ptr.vmem [resolvable:$true] %s509_s15  ;;  %s537_s17 = int_to_ptr.vmem [resolvable:$true] %s536_s17 }
 0x11b   : > { %s4496_s6 = sld [smem:[#allocation52_spill]]  ;;  %p4497_p8 = scmp.ne.s32.totalorder %s4479_s2, 0 }
 0x121   : > { %s3176_s3 = scalar_lea.hbm %s4496_s6, 512 }
 0x122   : > { %p3177_p6 = scmp.ne.s32.totalorder %s4496_s6, %s3176_s3  ;;  %p3183_p1 = scmp.lt.u32.totalorder %s3176_s3, %s4496_s6 }
 0x124   : > { %p3179_p2 = pnand %p3177_p6, %p4497_p8 }
 0x126   : > { %p3180_p5 = pneg %p3179_p2 }
 0x128   : > { %p3185_p0 = pnand %p3183_p1, %p3180_p5 }
 0x12a   : > { %3188 = shalt.err (!%p3185_p0)
}
 0x12b   : > { %s3189_s7 = scalar_lea.vmem %s510_s15, 512  ;;  %p3197_p13 = scmp.lt.s32.totalorder %s510_s15, %s510_s15 }
 0x12c   : > { %p3190_p9 = scmp.ne.s32.totalorder %s510_s15, %s3189_s7  ;;  %p3198_p4 = scmp.lt.s32.totalorder %s3189_s7, %s3189_s7 }
 0x12e   : > { %p3192_p10 = pnand %p3190_p9, %p4497_p8  ;;  %p3199_p7 = por %p3198_p4, %p3197_p13 }
 0x130   : > { %p3193_p11 = pneg %p3192_p10 }
 0x132   : > { %p3200_p3 = pnand %p3199_p7, %p3193_p11 }
 0x134   : > { %3203 = shalt.err (!%p3200_p3)
}
 0x135   : > { %p4498_p6 = scmp.ne.s32.totalorder %s4477_s1, 0  ;;  %s4499_s27 = smov 8  }
 0x136   : > { %s4500_s4 = smov 128   ;;  %s4501_s8 = sld [smem:[#allocation54_spill]] }
 0x137   : > { %2781 = dma.hbm_to_vmem [thread:$0]  (!%p4498_p6), %s4496_s6, 512, %s510_s15, [#allocation12], %s4500_s4, %s4500_s4, %s4499_s27  }
 0x13c   : > { %s3204_s20 = scalar_lea.hbm %s4501_s8, 16 }
 0x13d   : > { %p3205_p2 = scmp.ne.s32.totalorder %s4501_s8, %s3204_s20  ;;  %p3211_p1 = scmp.lt.u32.totalorder %s3204_s20, %s4501_s8 }
 0x13f   : > { %p3207_p3 = pnand %p3205_p2, %p4497_p8 }
 0x141   : > { %p3208_p5 = pneg %p3207_p3 }
 0x143   : > { %p3213_p0 = pnand %p3211_p1, %p3208_p5 }
 0x145   : > { %3216 = shalt.err (!%p3213_p0)
}
 0x146   : > { %s3217_s26 = scalar_lea.vmem %s537_s17, 16  ;;  %s3224_s15 = scalar_lea.vmem %s537_s17, 32 }
 0x147   : > { %p3218_p9 = scmp.ne.s32.totalorder %s537_s17, %s3217_s26  ;;  %p3225_p13 = scmp.lt.s32.totalorder %s537_s17, %s537_s17 }
 0x148   : > { %p3226_p4 = scmp.lt.s32.totalorder %s3224_s15, %s3217_s26 }
 0x149   : > { %p3220_p10 = pnand %p3218_p9, %p4497_p8 }
 0x14a   : > { %p3227_p7 = por %p3226_p4, %p3225_p13 }
 0x14b   : > { %p3221_p11 = pneg %p3220_p10 }
 0x14d   : > { %p3228_p12 = pnand %p3227_p7, %p3221_p11 }
 0x14f   : > { %3231 = shalt.err (!%p3228_p12)
}
 0x150   : > { %2787 = dma.hbm_to_vmem [thread:$0]  (!%p4498_p6), %s4501_s8, 16, %s537_s17, [#allocation15]  }
 0x151   : > { %s3566_s21 = smov [#allocation19]   ;;  %s3567_s5 = smov [#allocation22]  }
 0x152   : > { %s558_s9 = sshll.u32 %s3566_s21, 4  ;;  %s582_s20 = sshll.u32 %s3567_s5, 4  ;;  %s559_s9 = int_to_ptr.vmem [resolvable:$true] %s558_s9  ;;  %s583_s20 = int_to_ptr.vmem [resolvable:$true] %s582_s20 }
 0x153   : > { %s4502_s13 = sld [smem:[#allocation56_spill]] }
 0x159   : > { %s3232_s7 = scalar_lea.hbm %s4502_s13, 16 }
 0x15a   : > { %p3233_p12 = scmp.ne.s32.totalorder %s4502_s13, %s3232_s7  ;;  %p3239_p5 = scmp.lt.u32.totalorder %s3232_s7, %s4502_s13 }
 0x15c   : > { %p3235_p2 = pnand %p3233_p12, %p4497_p8 }
 0x15e   : > { %p3236_p3 = pneg %p3235_p2 }
 0x160   : > { %p3241_p1 = pnand %p3239_p5, %p3236_p3 }
 0x162   : > { %3244 = shalt.err (!%p3241_p1)
}
 0x163   : > { %s3245_s17 = scalar_lea.vmem %s559_s9, 16  ;;  %s3252_s4 = scalar_lea.vmem %s559_s9, 32 }
 0x164   : > { %p3246_p0 = scmp.ne.s32.totalorder %s559_s9, %s3245_s17  ;;  %p3253_p11 = scmp.lt.s32.totalorder %s559_s9, %s559_s9 }
 0x165   : > { %p3254_p13 = scmp.lt.s32.totalorder %s3252_s4, %s3245_s17 }
 0x166   : > { %p3248_p9 = pnand %p3246_p0, %p4497_p8 }
 0x167   : > { %p3255_p4 = por %p3254_p13, %p3253_p11 }
 0x168   : > { %p3249_p10 = pneg %p3248_p9 }
 0x16a   : > { %p3256_p7 = pnand %p3255_p4, %p3249_p10 }
 0x16c   : > { %3259 = shalt.err (!%p3256_p7)
}
 0x16d   : > { %2793 = dma.hbm_to_vmem [thread:$0]  (!%p4498_p6), %s4502_s13, 16, %s559_s9, [#allocation18]  }
 0x16e   : > { %s4503_s12 = sld [smem:[#allocation58_spill]] }
 0x174   : > { %s3260_s7 = scalar_lea.hbm %s4503_s12, 16 }
 0x175   : > { %p3261_p12 = scmp.ne.s32.totalorder %s4503_s12, %s3260_s7  ;;  %p3267_p5 = scmp.lt.u32.totalorder %s3260_s7, %s4503_s12 }
 0x177   : > { %p3263_p2 = pnand %p3261_p12, %p4497_p8 }
 0x179   : > { %p3264_p3 = pneg %p3263_p2 }
 0x17b   : > { %p3269_p1 = pnand %p3267_p5, %p3264_p3 }
 0x17d   : > { %3272 = shalt.err (!%p3269_p1)
}
 0x17e   : > { %s3273_s4 = scalar_lea.vmem %s583_s20, 16  ;;  %s3280_s9 = scalar_lea.vmem %s583_s20, 32 }
 0x17f   : > { %p3274_p0 = scmp.ne.s32.totalorder %s583_s20, %s3273_s4  ;;  %p3281_p11 = scmp.lt.s32.totalorder %s583_s20, %s583_s20 }
 0x180   : > { %p3282_p13 = scmp.lt.s32.totalorder %s3280_s9, %s3273_s4 }
 0x181   : > { %p3276_p9 = pnand %p3274_p0, %p4497_p8 }
 0x182   : > { %p3283_p4 = por %p3282_p13, %p3281_p11 }
 0x183   : > { %p3277_p10 = pneg %p3276_p9 }
 0x185   : > { %p3284_p7 = pnand %p3283_p4, %p3277_p10 }
 0x187   : > { %3287 = shalt.err (!%p3284_p7)
}
 0x188   : > { %2799 = dma.hbm_to_vmem [thread:$0]  (!%p4498_p6), %s4503_s12, 16, %s583_s20, [#allocation21]  }
 0x189   : > { %s3568_s6 = smov [#allocation25]   ;;  %s3569_s7 = smov [#allocation28]  }
 0x18a   : > { %s606_s3 = sshll.u32 %s3568_s6, 4  ;;  %s628_s26 = sshll.u32 %s3569_s7, 4  ;;  %s607_s3 = int_to_ptr.vmem [resolvable:$true] %s606_s3  ;;  %s629_s26 = int_to_ptr.vmem [resolvable:$true] %s628_s26 }
 0x18b   : > { %s4504_s17 = sld [smem:[#allocation60_spill]] }
 0x191   : > { %s3288_s8 = scalar_lea.hbm %s4504_s17, 16 }
 0x192   : > { %p3289_p12 = scmp.ne.s32.totalorder %s4504_s17, %s3288_s8  ;;  %p3295_p5 = scmp.lt.u32.totalorder %s3288_s8, %s4504_s17 }
 0x194   : > { %p3291_p2 = pnand %p3289_p12, %p4497_p8 }
 0x196   : > { %p3292_p3 = pneg %p3291_p2 }
 0x198   : > { %p3297_p1 = pnand %p3295_p5, %p3292_p3 }
 0x19a   : > { %3300 = shalt.err (!%p3297_p1)
}
 0x19b   : > { %s3301_s20 = scalar_lea.vmem %s607_s3, 16  ;;  %s3308_s5 = scalar_lea.vmem %s607_s3, 32 }
 0x19c   : > { %p3302_p0 = scmp.ne.s32.totalorder %s607_s3, %s3301_s20  ;;  %p3309_p11 = scmp.lt.s32.totalorder %s607_s3, %s607_s3 }
 0x19d   : > { %p3310_p13 = scmp.lt.s32.totalorder %s3308_s5, %s3301_s20 }
 0x19e   : > { %p3304_p9 = pnand %p3302_p0, %p4497_p8 }
 0x19f   : > { %p3311_p4 = por %p3310_p13, %p3309_p11 }
 0x1a0   : > { %p3305_p10 = pneg %p3304_p9 }
 0x1a2   : > { %p3312_p7 = pnand %p3311_p4, %p3305_p10 }
 0x1a4   : > { %3315 = shalt.err (!%p3312_p7)
}
 0x1a5   : > { %2805 = dma.hbm_to_vmem [thread:$0]  (!%p4498_p6), %s4504_s17, 16, %s607_s3, [#allocation24]  }
 0x1a6   : > { %s4505_s15 = sld [smem:[#allocation62_spill]] }
 0x1ac   : > { %s3316_s27 = scalar_lea.hbm %s4505_s15, 16 }
 0x1ad   : > { %p3317_p12 = scmp.ne.s32.totalorder %s4505_s15, %s3316_s27  ;;  %p3323_p5 = scmp.lt.u32.totalorder %s3316_s27, %s4505_s15 }
 0x1af   : > { %p3319_p2 = pnand %p3317_p12, %p4497_p8 }
 0x1b1   : > { %p3320_p3 = pneg %p3319_p2 }
 0x1b3   : > { %p3325_p1 = pnand %p3323_p5, %p3320_p3 }
 0x1b5   : > { %3328 = shalt.err (!%p3325_p1)
}
 0x1b6   : > { %s3329_s5 = scalar_lea.vmem %s629_s26, 16  ;;  %s3336_s3 = scalar_lea.vmem %s629_s26, 32 }
 0x1b7   : > { %p3330_p0 = scmp.ne.s32.totalorder %s629_s26, %s3329_s5  ;;  %p3337_p11 = scmp.lt.s32.totalorder %s629_s26, %s629_s26 }
 0x1b8   : > { %p3338_p13 = scmp.lt.s32.totalorder %s3336_s3, %s3329_s5 }
 0x1b9   : > { %p3332_p9 = pnand %p3330_p0, %p4497_p8 }
 0x1ba   : > { %p3339_p4 = por %p3338_p13, %p3337_p11 }
 0x1bb   : > { %p3333_p10 = pneg %p3332_p9 }
 0x1bd   : > { %p3340_p7 = pnand %p3339_p4, %p3333_p10 }
 0x1bf   : > { %3343 = shalt.err (!%p3340_p7)
}
 0x1c0   : > { %2811 = dma.hbm_to_vmem [thread:$0]  (!%p4498_p6), %s4505_s15, 16, %s629_s26, [#allocation27]  }
 0x1c1   : > { %s4506_s13 = sld [smem:[#allocation46_spill]]  ;;  %s643_s4 = scalar_lea.vmem [#allocation2], %s3926_s16 }
 0x1c2   : > { %s651_s1 = sshll.u32 %s643_s4, 4  ;;  %s4507_s20 = sld [smem:[#allocation48_spill]]  ;;  %s4097_s1 = int_to_ptr.vmem [resolvable:$true] %s651_s1 }
 0x1c3   : > { %s640_s3 = scalar_lea.sflag [#allocation3], %s3923_s14  ;;  %p4508_p6 = scmp.ne.s32.totalorder %s4495_s11, 0 }
 0x1c7   : > { %s4094_s27 = scalar_lea.hbm %s4506_s13, %s3929_s30  ;;  %s3349_s2 = scalar_lea.hbm %s4506_s13, 256 }
 0x1c8   : > { %s4103_s5 = scalar_lea.hbm %s4507_s20, %s3929_s30  ;;  %s3344_s26 = scalar_lea.hbm %s4094_s27, 128 }
 0x1c9   : > { %p3345_p8 = scmp.ne.s32.totalorder %s4094_s27, %s3344_s26  ;;  %p3350_p3 = scmp.lt.u32.totalorder %s4094_s27, %s4506_s13 }
 0x1ca   : > { %p3351_p5 = scmp.lt.u32.totalorder %s3349_s2, %s3344_s26  ;;  %p3353_p0 = scmp.lt.u32.totalorder %s3344_s26, %s4094_s27 }
 0x1cb   : > { %p3347_p12 = pnand %p3345_p8, %p4508_p6 }
 0x1cc   : > { %p3352_p1 = por %p3351_p5, %p3350_p3 }
 0x1cd   : > { %p3348_p2 = pneg %p3347_p12 }
 0x1ce   : > { %p3354_p9 = por %p3353_p0, %p3352_p1 }
 0x1d0   : > { %p3355_p10 = pnand %p3354_p9, %p3348_p2 }
 0x1d2   : > { %3358 = shalt.err (!%p3355_p10)
}
 0x1d3   : > { %s3359_s30 = scalar_lea.vmem %s4097_s1, 128  ;;  %s3570_s4 = smov [#allocation2]  }
 0x1d4   : > { %p3360_p11 = scmp.ne.s32.totalorder %s4097_s1, %s3359_s30  ;;  %s3364_s9 = sshll.u32 %s3570_s4, 4  ;;  %s3365_s9 = int_to_ptr.vmem [resolvable:$false] %s3364_s9 }
 0x1d5   : > { %s3366_s12 = scalar_lea.vmem %s3365_s9, 256  ;;  %p3367_p7 = scmp.lt.s32.totalorder %s4097_s1, %s3365_s9 }
 0x1d6   : > { %p3362_p13 = pnand %p3360_p11, %p4508_p6  ;;  %p3368_p8 = scmp.lt.s32.totalorder %s3366_s12, %s3359_s30 }
 0x1d8   : > { %p3363_p4 = pneg %p3362_p13  ;;  %p3369_p12 = por %p3368_p8, %p3367_p7 }
 0x1da   : > { %p3370_p3 = pnand %p3369_p12, %p3363_p4 }
 0x1dc   : > { %3373 = shalt.err (!%p3370_p3)
}
 0x1dd   : > { %p4509_p2 = scmp.ne.s32.totalorder %s4493_s10, 0  ;;  %s680_s21 = scalar_lea.vmem [#allocation7], %s3926_s16 }
 0x1de   : > { %s687_s26 = sshll.u32 %s680_s21, 4  ;;  %s2419_s6 = sshll.u32 %s3923_s14, 1  ;;  %s688_s26 = int_to_ptr.vmem [resolvable:$true] %s687_s26 }
 0x1df   : > { %2815 = dma.hbm_to_vmem [thread:$0]  (!%p4509_p2), %s4094_s27, 128, %s4097_s1, %s640_s3  }
 0x1e0   : > { %s3374_s7 = scalar_lea.hbm %s4103_s5, 128  ;;  %s3379_s30 = scalar_lea.hbm %s4507_s20, 256 }
 0x1e1   : > { %p3375_p5 = scmp.ne.s32.totalorder %s4103_s5, %s3374_s7  ;;  %p3380_p9 = scmp.lt.u32.totalorder %s4103_s5, %s4507_s20 }
 0x1e2   : > { %p3381_p10 = scmp.lt.u32.totalorder %s3379_s30, %s3374_s7  ;;  %p3383_p13 = scmp.lt.u32.totalorder %s3374_s7, %s4103_s5 }
 0x1e3   : > { %p3377_p1 = pnand %p3375_p5, %p4508_p6 }
 0x1e4   : > { %p3382_p11 = por %p3381_p10, %p3380_p9 }
 0x1e5   : > { %p3378_p0 = pneg %p3377_p1 }
 0x1e6   : > { %p3384_p4 = por %p3383_p13, %p3382_p11 }
 0x1e8   : > { %p3385_p7 = pnand %p3384_p4, %p3378_p0 }
 0x1ea   : > { %3388 = shalt.err (!%p3385_p7)
}
 0x1eb   : > { %s3389_s16 = scalar_lea.vmem %s688_s26, 128  ;;  %s3571_s27 = smov [#allocation7]  }
 0x1ec   : > { %p3390_p8 = scmp.ne.s32.totalorder %s688_s26, %s3389_s16  ;;  %s3394_s1 = sshll.u32 %s3571_s27, 4  ;;  %s3395_s1 = int_to_ptr.vmem [resolvable:$false] %s3394_s1 }
 0x1ed   : > { %s3396_s3 = scalar_lea.vmem %s3395_s1, 256  ;;  %p3397_p5 = scmp.lt.s32.totalorder %s688_s26, %s3395_s1 }
 0x1ee   : > { %p3392_p12 = pnand %p3390_p8, %p4508_p6  ;;  %p3398_p1 = scmp.lt.s32.totalorder %s3396_s3, %s3389_s16 }
 0x1f0   : > { %p3393_p3 = pneg %p3392_p12  ;;  %p3399_p2 = por %p3398_p1, %p3397_p5 }
 0x1f2   : > { %p3400_p9 = pnand %p3399_p2, %p3393_p3 }
 0x1f4   : > { %3403 = shalt.err (!%p3400_p9)
}
 0x1f5   : > { %p4510_p10 = scmp.ne.s32.totalorder %s4493_s10, 0  ;;  %s2420_s12 = sshll.u32 %s3548_s28, 5 }
 0x1f6   : > { %s698_s21 = scalar_lea.vmem [#allocation8], %s2419_s6  ;;  %s4511_s30 = sld [smem:[#allocation49_spill]] }
 0x1f7   : > { %2821 = dma.hbm_to_vmem [thread:$0]  (!%p4510_p10), %s4103_s5, 128, %s688_s26, %s3949_s22  }
 0x1f8   : > { %s706_s7 = sshll.u32 %s698_s21, 4  ;;  %s4512_s9 = sand.u32 1, %s3552_s29   ;;  %s707_s7 = int_to_ptr.vmem [resolvable:$true] %s706_s7 }
 0x1f9   : > { %s695_s16 = scalar_lea.sflag [#allocation9], %s4512_s9 }
 0x1fc   : > { %s4153_s4 = scalar_lea.hbm %s4511_s30, %s2420_s12  ;;  %s3409_s5 = scalar_lea.hbm %s4511_s30, 64 }
 0x1fd   : > { %s3404_s27 = scalar_lea.hbm %s4153_s4, 32  ;;  %p3410_p13 = scmp.lt.u32.totalorder %s4153_s4, %s4511_s30 }
 0x1fe   : > { %p3405_p2 = scmp.ne.s32.totalorder %s4153_s4, %s3404_s27  ;;  %p3411_p4 = scmp.lt.u32.totalorder %s3409_s5, %s3404_s27 }
 0x1ff   : > { %p3413_p8 = scmp.lt.u32.totalorder %s3404_s27, %s4153_s4 }
 0x200   : > { %p3407_p0 = pnand %p3405_p2, %p4508_p6  ;;  %p3412_p7 = por %p3411_p4, %p3410_p13 }
 0x202   : > { %p3408_p11 = pneg %p3407_p0  ;;  %p3414_p12 = por %p3413_p8, %p3412_p7 }
 0x204   : > { %p3415_p3 = pnand %p3414_p12, %p3408_p11 }
 0x206   : > { %3418 = shalt.err (!%p3415_p3)
}
 0x207   : > { %s3419_s1 = scalar_lea.vmem %s707_s7, 32  ;;  %s3572_s3 = smov [#allocation8]  }
 0x208   : > { %p3420_p5 = scmp.ne.s32.totalorder %s707_s7, %s3419_s1  ;;  %s3424_s12 = sshll.u32 %s3572_s3, 4  ;;  %s3425_s12 = int_to_ptr.vmem [resolvable:$false] %s3424_s12 }
 0x209   : > { %s3426_s21 = scalar_lea.vmem %s3425_s12, 64  ;;  %p3427_p2 = scmp.lt.s32.totalorder %s707_s7, %s3425_s12 }
 0x20a   : > { %p3422_p1 = pnand %p3420_p5, %p4508_p6  ;;  %p3428_p0 = scmp.lt.s32.totalorder %s3426_s21, %s3419_s1 }
 0x20c   : > { %p3423_p9 = pneg %p3422_p1  ;;  %p3429_p10 = por %p3428_p0, %p3427_p2 }
 0x20e   : > { %p3430_p4 = pnand %p3429_p10, %p3423_p9 }
 0x210   : > { %3433 = shalt.err (!%p3430_p4)
}
 0x211   : > { %p4513_p13 = scmp.ne.s32.totalorder %s4493_s10, 0  ;;  %s4514_s2 = sld [smem:[#allocation43_spill]] }
 0x213   : > { %2824 = dma.hbm_to_vmem [thread:$0]  (!%p4513_p13), %s4153_s4, 32, %s707_s7, %s695_s16  }
 0x217   : > { %p4515_p11 = scmp.ne.s32.totalorder %s4514_s2, 0 }
 0x218   : > { %s4177_s11 = sand.u32 (!%p4515_p11), 1, %s3536_s25   ;;  %p4516_p6 = scmp.ne.s32.totalorder (!%p4515_p11), %s4489_s18, 0 }
 0x219   : > { %715 = sbr.rel (%p4515_p11) target bundleno = 3076 (0xc04), region = 88  ;;  %s4180_s8 = sshll.u32 (!%p4515_p11), %s4177_s11, 3 }
 0x21a   : > { %s718_s9 = scalar_lea.sflag (!%p4515_p11), [#allocation3], %s4177_s11  ;;  %s721_s27 = scalar_lea.vmem (!%p4515_p11), [#allocation2], %s4180_s8 }
 0x220   : > { %3487 = dma.done.wait (%p4516_p6), %s718_s9, 128  }
 0x221   : > { %3489 = vsyncadd (%p4516_p6), %s718_s9, 4294967168  ;;  %s726_s10 = sand.u32 1, %s3705_s0   ;;  %s730_s4 = scalar_lea.vmem [#allocation5], %s4180_s8 }
 0x222   : > { %s727_s7 = scalar_lea.sflag [#allocation6], %s726_s10 }
 0x223   : > { %3491 = dma.done.wait (%p4516_p6), %s727_s7, 256  }
 0x224   : > { %3493 = vsyncadd (%p4516_p6), %s727_s7, 4294967040  ;;  %s2425_s16 = sshll.u32 %s4177_s11, 1  ;;  %s739_s14 = scalar_lea.vmem [#allocation7], %s4180_s8 }
 0x225   : > { %s745_s22 = scalar_lea.sflag [#allocation9], %s726_s10  ;;  %s4196_s5 = scalar_lea.vmem [#allocation8], %s2425_s16 }
 0x226   : > { %3495 = dma.done.wait (%p4516_p6), %s745_s22, 32  }
 0x227   : > { %3497 = vsyncadd (%p4516_p6), %s745_s22, 4294967264  ;;  %p4517_p10 = scmp.eq.s32.totalorder %s3705_s0, 0 }
 0x229   : > { %3499 = dma.done.wait (%p4517_p10), [#allocation9], 512   ;;  %p4518_p7 = pmov %p4517_p10 }
 0x22b   : > { %3501 = vsyncadd (%p4518_p7), [#allocation9], 4294966784  ;;  %p4519_p8 = pmov %p4518_p7 }
 0x22c   : > { %p4520_p12 = pmov %p4518_p7 }
 0x22d   : > { %3503 = dma.done.wait (%p4519_p8), [#allocation12], 1024  }
 0x22e   : > { %3505 = vsyncadd (%p4520_p12), [#allocation12], 4294966272  ;;  %p4521_p3 = pmov %p4518_p7 }
 0x230   : > { %3507 = dma.done.wait (%p4521_p3), [#allocation15], 528   ;;  %p4522_p5 = pmov %p4521_p3 }
 0x231   : > { %p4523_p1 = pmov %p4521_p3 }
 0x232   : > { %3509 = vsyncadd (%p4522_p5), [#allocation15], 4294966768 }
 0x233   : > { %3511 = dma.done.wait (%p4523_p1), [#allocation18], 32   ;;  %p4524_p9 = pmov %p4523_p1 }
 0x234   : > { %p4525_p2 = pmov %p4523_p1 }
 0x235   : > { %3513 = vsyncadd (%p4524_p9), [#allocation18], 4294967264 }
 0x236   : > { %3515 = dma.done.wait (%p4525_p2), [#allocation21], 528   ;;  %p4526_p0 = pmov %p4523_p1 }
 0x238   : > { %3517 = vsyncadd (%p4526_p0), [#allocation21], 4294966768  ;;  %p4527_p4 = pmov %p4526_p0 }
 0x239   : > { %p4528_p13 = pmov %p4526_p0 }
 0x23a   : > { %3519 = dma.done.wait (%p4527_p4), [#allocation24], 2064  }
 0x23b   : > { %3521 = vsyncadd (%p4528_p13), [#allocation24], 4294965232  ;;  %p4529_p11 = pmov %p4526_p0 }
 0x23c   : > { %p4530_p6 = pmov %p4526_p0 }
 0x23d   : > { %3523 = dma.done.wait (%p4529_p11), [#allocation27], 32  }
 0x23e   : > { %3525 = vsyncadd (%p4530_p6), [#allocation27], 4294967264  ;;  %v3573_v0 = vmov 0.0|0.0   ;;  %vm3574_vm0 = vmmov 0   ;;  %v3575_v1 = vmov 0.0   ;;  %v871_v2 = vld [vmem:[#allocation10] sm:$0xff] }
 0x23f   : > { %2656 = vmatprep.subr.bf16.mxu1 %v3573_v0  ;;  %2534 = vmatprep.mubr.msk.f32.mxu1 %vm3574_vm0, %v3575_v1  ;;  %v872_v3 = vld [vmem:[#allocation10 + $0x8] sm:$0xff]  ;;  %v873_v4 = vld [vmem:[#allocation10 + $0x10] sm:$0xff]  ;;  %v874_v6 = vld [vmem:[#allocation10 + $0x18] sm:$0xff]  ;;  %vm875_vm1 = vcmask 261120   ;;  %vm1106_vm2 = vcmask 64512   ;;  %s3576_s0 = smov 112  }
 0x240   : > { %2569 = vmatprep.subr.mxu0 %v3575_v1  ;;  %2571 = vmatprep.mubr.msk.f32.mxu0 %vm3574_vm0, %v3575_v1  ;;  %v2657_v5 = vpack.c.bf16 %v872_v3, %v871_v2  ;;  %v2660_v7 = vpack.c.bf16 %v874_v6, %v873_v4  ;;  %v950_v8 = vld [vmem:[#allocation11] sm:$0xff]  ;;  %v951_v9 = vld [vmem:[#allocation11 + $0x8] sm:$0xff]  ;;  %v952_v12 = vld [vmem:[#allocation11 + $0x10] sm:$0xff]  ;;  %s3577_s18 = smov 120   ;;  %s3578_s26 = smov 104   ;;  %v3579_v37 = vmov 0  }
 0x241   : > { %v4239_v10 = vld [vmem:[%s721_s27] sm:$0xff]  ;;  %v2663_v11 = vpack.c.bf16 %v951_v9, %v950_v8  ;;  %v1027_v15 = vld [vmem:[#allocation13] sm:$0xff]  ;;  %v1104_v36 = vld [vmem:[%s4196_s5] sm:$0x3]  ;;  %s3580_s6 = smov 8   ;;  %s3581_s1 = smov 16  }
 0x242   : > { %2658 = vmatpush3.bf16.msra.mxu1 %v2657_v5  ;;  %v953_v13 = vld [vmem:[#allocation11 + $0x18] sm:$0xff]  ;;  %v1028_v16 = vld [vmem:[#allocation13 + $0x8] sm:$0xff]  ;;  %v1029_v19 = vld [vmem:[#allocation13 + $0x10] sm:$0xff]  ;;  %vm1105_vm3 = vnez %v1104_v36  ;;  %s3582_s3 = smov 24   ;;  %vm1783_vm5 = vcmask 130048   ;;  %vm1785_vm6 = vcmask 195584  }
 0x243   : > { %2659 = vmatprep.subr.bf16.mxu1 %v3573_v0  ;;  %v2666_v14 = vpack.c.bf16 %v953_v13, %v952_v12  ;;  %v869_v17 = vld [vmem:[%s730_s4] sm:$0xff]  ;;  %v2669_v18 = vpack.c.bf16 %v1028_v16, %v1027_v15  ;;  %v870_v22 = vld [vmem:[%s739_s14] sm:$0xff]  ;;  %v1183_v38 = vsel %vm1105_vm3, 16843009, %v3579_v37  ;;  %s4533_s12 = sld [smem:[#allocation42_spill]]  ;;  %s865_s2 = scalar_lea.vmem [#allocation29], %s4180_s8 }
 0x244   : > { %v1030_v20 = vld [vmem:[#allocation13 + $0x18] sm:$0xff]  ;;  %v1184_v39 = vunpack.c.0.s8 %v1183_v38  ;;  %v1789_v36 = vld [vmem:[#allocation14 + $0x10] sm:$0xff]  ;;  %s2126_s9 = sshll.u32 %s865_s2, 4  ;;  %s4534_s7 = sld [smem:[#allocation63_spill]]  ;;  %s4359_s9 = int_to_ptr.vmem [resolvable:$true] %s2126_s9 }
 0x245   : > { %v2672_v21 = vpack.c.bf16 %v1030_v20, %v1029_v19  ;;  %v1790_v37 = vld [vmem:[#allocation14 + $0x18] sm:$0xff]  ;;  %s2112_s16 = scalar_lea.sflag [#allocation4], %s4177_s11  ;;  %s3434_s14 = scalar_lea.vmem %s4359_s9, 128 }
 0x246   : > { %2661 = vmatpush3.bf16.msra.mxu1 %v2660_v7  ;;  %vm4291_vm4 = vcmp.ne.s32.totalorder %v1184_v39, 0  ;;  %v2678_v38 = vpack.c.bf16 %v1790_v37, %v1789_v36  ;;  %v2002_v36 = vld [vmem:[#allocation23 + $0x78] sm:$0xff]  ;;  %p3435_p10 = scmp.ne.s32.totalorder %s4359_s9, %s3434_s14  ;;  %p4535_p7 = scmp.ne.s32.totalorder %s4490_s19, 0 }
 0x247   : > { %2662 = vmatprep.subr.bf16.mxu1 %v3573_v0  ;;  %s3583_s8 = smov [#allocation29]  }
 0x248   : > { %p3436_p8 = pnand %p3435_p10, %p4535_p7  ;;  %s3438_s22 = sshll.u32 %s3583_s8, 4  ;;  %s3439_s22 = int_to_ptr.vmem [resolvable:$false] %s3438_s22 }
 0x249   : > { %2535 = vmatmul.mubr.msk.f32.vlgmr.msra.gmra.mrb[0].mxu1 %vm875_vm1, %v4239_v10  ;;  %s2465_s21 = sshll.u32 %s4533_s12, 7  ;;  %s3440_s5 = scalar_lea.vmem %s3439_s22, 256 }
 0x24a   : > { %2664 = vmatpush3.bf16.msra.mxu1 %v2663_v11  ;;  %2545 = vmatprep.mubr.msk.f32.mxu1 %vm3574_vm0, %v3575_v1  ;;  %s4357_s4 = scalar_lea.hbm %s4534_s7, %s2465_s21  ;;  %p3437_p12 = pneg %p3436_p8 }
 0x24b   : > { %2665 = vmatprep.subr.bf16.mxu1 %v3573_v0  ;;  %p3441_p3 = scmp.lt.s32.totalorder %s4359_s9, %s3439_s22  ;;  %p3442_p5 = scmp.lt.s32.totalorder %s3440_s5, %s3434_s14 }
 0x24d   : > { %p3443_p1 = por %p3442_p5, %p3441_p3 }
 0x24e   : > { %2667 = vmatpush3.bf16.msra.mxu1 %v2666_v14 }
 0x24f   : > { %2668 = vmatprep.subr.bf16.mxu1 %v3573_v0  ;;  %p3444_p9 = pnand %p3443_p1, %p3437_p12 }
 0x251   : > { %2546 = vmatmul.mubr.msk.f32.vlgmr.msra.gmra.mrb[2].mxu1 %vm875_vm1, %v869_v17 }
 0x252   : > { %2670 = vmatpush3.bf16.msra.mxu1 %v2669_v18  ;;  %2556 = vmatprep.mubr.msk.f32.mxu1 %vm3574_vm0, %v3575_v1 }
 0x253   : > { %2671 = vmatprep.subr.bf16.mxu1 %v3573_v0 }
 0x256   : > { %2673 = vmatpush3.bf16.msra.mxu1 %v2672_v21 }
 0x257   : > { %2559 = vmatprep.subr.mxu1 %v3575_v1 }
 0x259   : > { %2557 = vmatmul.mubr.msk.f32.vlgmr.msra.gmra.mrb[4].mxu1 %vm875_vm1, %v870_v22 }
 0x25a   : > { %2561 = vmatprep.mubr.msk.f32.mxu1 %vm3574_vm0, %v3575_v1 }
 0x31c   : > { %v945_v23 = vpop.f32.mrb[0].mxu1 }
 0x31d   : > { %v2536_v24 = vpop.f32.mrb[1].mxu1  ;;  %v949_v27 = vmul.f32 0.17677669, %v945_v23 }
 0x324   : > { %v1023_v25 = vpop.f32.mrb[2].mxu1 }
 0x325   : > { %1440 = vrot.lane.b32.xlu1 %v1023_v25, %s3576_s0  ;;  %1273 = vrot.lane.b32.xlu0 %v1023_v25, %s3577_s18  ;;  %v2547_v26 = vpop.f32.mrb[3].mxu1 }
 0x326   : > { %2560 = vmatpush3.xpose.msk.msra.mxu1 %vm1106_vm2, %v1023_v25 }
 0x327   : > { %2564 = vmatprep.subr.mxu1 %v3575_v1 }
 0x329   : > { %2562 = vmatmul.mubr.msk.f32.vlgmr.msra.gmra.mrb[6].mxu1 %vm1106_vm2, %v949_v27  ;;  %1438 = vrot.lane.b32.xlu1 %v949_v27, %s3576_s0 }
 0x32a   : > { %1271 = vrot.lane.b32.xlu0 %v949_v27, %s3577_s18  ;;  %2566 = vmatprep.mubr.msk.f32.mxu1 %vm3574_vm0, %v3575_v1 }
 0x32c   : > { %v4271_v28 = vpop.f32.mrb[4].mxu1 }
 0x32d   : > { %1604 = vrot.lane.b32.xlu1 %v949_v27, %s3578_s26  ;;  %v2558_v29 = vpop.f32.mrb[5].mxu1  ;;  %2565 = vmatpush3.msra.mxu1 %v4271_v28 }
 0x32e   : > { %1606 = vrot.lane.b32.xlu0 %v1023_v25, %s3578_s26  ;;  %2574 = vmatprep.subr.mxu1 %v3575_v1 }
 0x397   : > { %v1274_v30 = vpop.permute.xlu0 %1273  ;;  %v1441_v31 = vpop.permute.xlu1 %1440 }
 0x398   : > { %2570 = vmatpush3.xpose.msk.msra.mxu0 %vm1106_vm2, %v1274_v30 }
 0x399   : > { %2579 = vmatprep.subr.mxu0 %v3575_v1 }
 0x39b   : > { %v1439_v33 = vpop.permute.xlu1 %1438 }
 0x39c   : > { %v1272_v32 = vpop.permute.xlu0 %1271 }
 0x39d   : > { %2572 = vmatmul.mubr.msk.f32.vlgmr.msra.gmra.mrb[0].mxu0 %vm1106_vm2, %v1272_v32 }
 0x39e   : > { %2580 = vmatpush3.xpose.msk.msra.mxu0 %vm1106_vm2, %v1441_v31  ;;  %2581 = vmatprep.mubr.msk.f32.mxu0 %vm3574_vm0, %v3575_v1 }
 0x39f   : > { %2589 = vmatprep.subr.mxu0 %v3575_v1  ;;  %v1605_v35 = vpop.permute.xlu1 %1604 }
 0x3a0   : > { %v1607_v34 = vpop.permute.xlu0 %1606 }
 0x3a1   : > { %2582 = vmatmul.mubr.msk.f32.vlgmr.msra.gmra.mrb[2].mxu0 %vm1106_vm2, %v1439_v33  ;;  %v1787_v33 = vld [vmem:[#allocation14] sm:$0xff] }
 0x3a2   : > { %2590 = vmatpush3.xpose.msk.msra.mxu0 %vm1106_vm2, %v1607_v34  ;;  %2591 = vmatprep.mubr.msk.f32.mxu0 %vm3574_vm0, %v3575_v1  ;;  %v1788_v34 = vld [vmem:[#allocation14 + $0x8] sm:$0xff] }
 0x3a3   : > { %2674 = vmatprep.subr.bf16.mxu0 %v3573_v0 }
 0x3a5   : > { %2592 = vmatmul.mubr.msk.f32.vlgmr.msra.gmra.mrb[4].mxu0 %vm1106_vm2, %v1605_v35  ;;  %v2675_v35 = vpack.c.bf16 %v1788_v34, %v1787_v33 }
 0x3a6   : > { %2607 = vmatprep.mubr.msk.f32.mxu0 %vm3574_vm0, %v3575_v1 }
 0x3a7   : > { %2676 = vmatpush3.bf16.msra.mxu0 %v2675_v35  ;;  %v2001_v35 = vld [vmem:[#allocation23 + $0x70] sm:$0xff] }
 0x3a8   : > { %2677 = vmatprep.subr.bf16.mxu0 %v3573_v0  ;;  %v2708_v37 = vpack.c.bf16 %v2002_v36, %v2001_v35 }
 0x3ab   : > { %2679 = vmatpush3.bf16.msra.mxu0 %v2678_v38  ;;  %v2459_v38 = vld [vmem:[#allocation22] ss:$0 sm:$0xff] }
 0x3ac   : > { %2686 = vmatprep.subr.bf16.mxu0 %v3573_v0 }
 0x3fc   : > { %v1179_v41 = vpop.f32.mrb[6].mxu1 }
 0x3fd   : > { %v1186_v42 = vsel %vm4291_vm4, %v1179_v41, -1e+20  ;;  %v2563_v43 = vpop.f32.mrb[7].mxu1 }
 0x3fe   : > { %v1187_v44 = vsel %vm1106_vm2, %v1186_v42, -inf }
 0x3ff   : > { %1188 = vmax.xlane.f32.xlu0 %v1187_v44 }
 0x470   : > { %v1345_v45 = vpop.f32.mrb[0].mxu0 }
 0x471   : > { %v1349_v46 = vsel %vm4291_vm4, %v1345_v45, -1e+20  ;;  %v2573_v47 = vpop.f32.mrb[1].mxu0 }
 0x472   : > { %v1350_v48 = vsel %vm1106_vm2, %v1349_v46, -inf }
 0x473   : > { %1351 = vmax.xlane.f32.xlu1 %v1350_v48 }
 0x474   : > { %v1512_v49 = vpop.f32.mrb[2].mxu0 }
 0x475   : > { %v1516_v50 = vsel %vm4291_vm4, %v1512_v49, -1e+20  ;;  %v2583_v51 = vpop.f32.mrb[3].mxu0 }
 0x476   : > { %v1517_v52 = vsel %vm1106_vm2, %v1516_v50, -inf  ;;  %v2455_v51 = vld [vmem:[#allocation16] ss:$0 sm:$0xff] }
 0x477   : > { %1518 = vmax.xlane.f32.xlu0 %v1517_v52 }
 0x478   : > { %v1678_v53 = vpop.f32.mrb[4].mxu0 }
 0x479   : > { %v1682_v54 = vsel %vm4291_vm4, %v1678_v53, -1e+20  ;;  %v2593_v55 = vpop.f32.mrb[5].mxu0 }
 0x47a   : > { %v1683_v56 = vsel %vm1106_vm2, %v1682_v54, -inf }
 0x47b   : > { %1684 = vmax.xlane.f32.xlu0 %v1683_v56 }
 0x484   : > { %1362 = vrot.lane.b32.xlu1 %v4271_v28, %s3577_s18 }
 0x48c   : > { %v1189_v57 = vpop.xlane.xlu0 %1188 }
 0x48d   : > { %v1190_v58 = vsub.f32 %v1186_v42, %v1189_v57 }
 0x48f   : > { %v1191_v59 = vmul.f32 1.442695, %v1190_v58 }
 0x491   : > { %2930 = vpow2.f32 %v1191_v59 }
 0x49b   : > { %v2931_v60 = vpop.eup %2930 }
 0x49c   : > { %v1193_v61 = vsel %vm1106_vm2, %v2931_v60, 0.0 }
 0x4a8   : > { %1194 = vadd.xlane.f32.xlu1 %v1193_v61 }
 0x500   : > { %v1352_v62 = vpop.xlane.xlu1 %1351 }
 0x501   : > { %v1353_v63 = vsub.f32 %v1349_v46, %v1352_v62  ;;  %v1902_v62 = vld [vmem:[#allocation20] sm:$0xff] }
 0x503   : > { %v1354_v2 = vmul.f32 1.442695, %v1353_v63  ;;  %v1903_v63 = vld [vmem:[#allocation20 + $0x8] sm:$0xff] }
 0x504   : > { %v1519_v3 = vpop.xlane.xlu0 %1518  ;;  %v1363_v16 = vpop.permute.xlu1 %1362 }
 0x505   : > { %2932 = vpow2.f32 %v1354_v2  ;;  %v1520_v4 = vsub.f32 %v1516_v50, %v1519_v3  ;;  %v2681_v2 = vpack.c.bf16 %v1903_v63, %v1902_v62  ;;  %v1905_v3 = vld [vmem:[#allocation20 + $0x18] sm:$0xff] }
 0x507   : > { %v1521_v5 = vmul.f32 1.442695, %v1520_v4 }
 0x508   : > { %v1685_v6 = vpop.xlane.xlu0 %1684 }
 0x509   : > { %2934 = vpow2.f32 %v1521_v5  ;;  %v1686_v7 = vsub.f32 %v1682_v54, %v1685_v6  ;;  %v1988_v5 = vld [vmem:[#allocation23 + $0x8] sm:$0xff]  ;;  %v1989_v6 = vld [vmem:[#allocation23 + $0x10] sm:$0xff] }
 0x50b   : > { %v1687_v8 = vmul.f32 1.442695, %v1686_v7 }
 0x50d   : > { %2936 = vpow2.f32 %v1687_v8  ;;  %v1990_v8 = vld [vmem:[#allocation23 + $0x18] sm:$0xff] }
 0x50f   : > { %v2933_v9 = vpop.eup %2932 }
 0x510   : > { %v1356_v11 = vsel %vm1106_vm2, %v2933_v9, 0.0 }
 0x511   : > { %1357 = vadd.xlane.f32.xlu0 %v1356_v11  ;;  %v1991_v11 = vld [vmem:[#allocation23 + $0x20] sm:$0xff] }
 0x513   : > { %v2935_v12 = vpop.eup %2934 }
 0x514   : > { %v1523_v13 = vsel %vm1106_vm2, %v2935_v12, 0.0 }
 0x515   : > { %1524 = vadd.xlane.f32.xlu1 %v1523_v13 }
 0x517   : > { %v2937_v14 = vpop.eup %2936 }
 0x518   : > { %v1689_v15 = vsel %vm1106_vm2, %v2937_v14, 0.0 }
 0x519   : > { %1690 = vadd.xlane.f32.xlu0 %v1689_v15  ;;  %v1994_v15 = vld [vmem:[#allocation23 + $0x38] sm:$0xff] }
 0x526   : > { %1694 = vrot.lane.b32.xlu1 %v4271_v28, %s3578_s26 }
 0x52f   : > { %1528 = vrot.lane.b32.xlu0 %v4271_v28, %s3576_s0 }
 0x535   : > { %v1195_v17 = vpop.xlane.xlu1 %1194 }
 0x536   : > { %2938 = vrcp.f32 %v1195_v17  ;;  %v1995_v17 = vld [vmem:[#allocation23 + $0x40] sm:$0xff] }
 0x540   : > { %v2939_v18 = vpop.eup %2938 }
 0x541   : > { %v1197_v19 = vmul.f32 %v2939_v18, %v2931_v60  ;;  %v1996_v18 = vld [vmem:[#allocation23 + $0x48] sm:$0xff] }
 0x543   : > { %2567 = vmatmul.mubr.msk.f32.vlgmr.msra.gmra.mrb[8].mxu1 %vm1106_vm2, %v1197_v19  ;;  %v2699_v19 = vpack.c.bf16 %v1996_v18, %v1995_v17 }
 0x544   : > { %2575 = vmatpush3.msra.mxu1 %v1363_v16  ;;  %2576 = vmatprep.mubr.msk.f32.mxu1 %vm3574_vm0, %v3575_v1 }
 0x545   : > { %2584 = vmatprep.subr.mxu1 %v3575_v1 }
 0x59e   : > { %v1358_v20 = vpop.xlane.xlu0 %1357 }
 0x59f   : > { %2940 = vrcp.f32 %v1358_v20  ;;  %v1997_v20 = vld [vmem:[#allocation23 + $0x50] sm:$0xff] }
 0x5a2   : > { %v1525_v21 = vpop.xlane.xlu1 %1524 }
 0x5a3   : > { %2942 = vrcp.f32 %v1525_v21  ;;  %v1998_v21 = vld [vmem:[#allocation23 + $0x58] sm:$0xff] }
 0x5a6   : > { %v1691_v22 = vpop.xlane.xlu0 %1690  ;;  %v1695_v28 = vpop.permute.xlu1 %1694 }
 0x5a7   : > { %2944 = vrcp.f32 %v1691_v22  ;;  %v2702_v22 = vpack.c.bf16 %v1998_v21, %v1997_v20 }
 0x5a9   : > { %v2941_v23 = vpop.eup %2940 }
 0x5aa   : > { %v1360_v24 = vmul.f32 %v2941_v23, %v2933_v9  ;;  %v1529_v25 = vpop.permute.xlu0 %1528  ;;  %v2690_v9 = vpack.c.bf16 %v1990_v8, %v1989_v6  ;;  %v1999_v23 = vld [vmem:[#allocation23 + $0x60] sm:$0xff] }
 0x5ac   : > { %2577 = vmatmul.mubr.msk.f32.vlgmr.msra.gmra.mrb[10].mxu1 %vm1106_vm2, %v1360_v24  ;;  %v2000_v24 = vld [vmem:[#allocation23 + $0x68] sm:$0xff] }
 0x5ad   : > { %v2943_v26 = vpop.eup %2942  ;;  %2585 = vmatpush3.msra.mxu1 %v1529_v25  ;;  %2586 = vmatprep.mubr.msk.f32.mxu1 %vm3574_vm0, %v3575_v1  ;;  %v2705_v25 = vpack.c.bf16 %v2000_v24, %v1999_v23 }
 0x5ae   : > { %v1527_v27 = vmul.f32 %v2943_v26, %v2935_v12  ;;  %2594 = vmatprep.subr.mxu1 %v3575_v1  ;;  %v1992_v12 = vld [vmem:[#allocation23 + $0x28] sm:$0xff] }
 0x5af   : > { %v2693_v13 = vpack.c.bf16 %v1992_v12, %v1991_v11 }
 0x5b0   : > { %2587 = vmatmul.mubr.msk.f32.vlgmr.msra.gmra.mrb[12].mxu1 %vm1106_vm2, %v1527_v27 }
 0x5b1   : > { %v2945_v29 = vpop.eup %2944  ;;  %2595 = vmatpush3.msra.mxu1 %v1695_v28  ;;  %2596 = vmatprep.mubr.msk.f32.mxu1 %vm3574_vm0, %v3575_v1 }
 0x5b2   : > { %v1693_v30 = vmul.f32 %v2945_v29, %v2937_v14  ;;  %2680 = vmatprep.subr.bf16.mxu1 %v3573_v0  ;;  %v1993_v14 = vld [vmem:[#allocation23 + $0x30] sm:$0xff] }
 0x5b3   : > { %v2696_v16 = vpack.c.bf16 %v1994_v15, %v1993_v14 }
 0x5b4   : > { %2597 = vmatmul.mubr.msk.f32.vlgmr.msra.gmra.mrb[14].mxu1 %vm1106_vm2, %v1693_v30  ;;  %v2457_v30 = vld [vmem:[#allocation17] ss:$0 sm:$0xff] }
 0x5b5   : > { %2618 = vmatprep.mubr.msk.f32.mxu1 %vm3574_vm0, %v3575_v1  ;;  %2682 = vmatpush3.bf16.msra.mxu1 %v2681_v2 }
 0x5b6   : > { %2683 = vmatprep.subr.bf16.mxu1 %v3573_v0 }
 0x616   : > { %v1267_v31 = vpop.f32.mrb[8].mxu1 }
 0x617   : > { %v2568_v32 = vpop.f32.mrb[9].mxu1 }
 0x618   : > { %v2458_v32 = vld [vmem:[#allocation19] ss:$0 sm:$0xff] }
 0x67f   : > { %v1434_v39 = vpop.f32.mrb[10].mxu1 }
 0x680   : > { %1771 = vrot.lane.b32.xlu1 %v1434_v39, %s3580_s6  ;;  %v2578_v40 = vpop.f32.mrb[11].mxu1 }
 0x683   : > { %v1600_v41 = vpop.f32.mrb[12].mxu1 }
 0x684   : > { %1775 = vrot.lane.b32.xlu0 %v1600_v41, %s3581_s1  ;;  %v2588_v42 = vpop.f32.mrb[13].mxu1 }
 0x685   : > { %v2461_v42 = vld [vmem:[#allocation25] ss:$0 sm:$0xff] }
 0x687   : > { %v1766_v43 = vpop.f32.mrb[14].mxu1 }
 0x688   : > { %1779 = vrot.lane.b32.xlu1 %v1766_v43, %s3582_s3  ;;  %v2598_v44 = vpop.f32.mrb[15].mxu1 }
 0x6f2   : > { %v1772_v45 = vpop.permute.xlu1 %1771 }
 0x6f3   : > { %v1782_v47 = vsel %vm1106_vm2, %v1267_v31, %v1772_v45 }
 0x6f6   : > { %v1776_v46 = vpop.permute.xlu0 %1775 }
 0x6f7   : > { %v1784_v48 = vsel %vm1783_vm5, %v1782_v47, %v1776_v46 }
 0x6fa   : > { %v1780_v49 = vpop.permute.xlu1 %1779 }
 0x6fb   : > { %v1786_v50 = vsel %vm1785_vm6, %v1784_v48, %v1780_v49 }
 0x6fc   : > { %2608 = vmatmul.mubr.msk.f32.vlgmr.msra.gmra.mrb[6].mxu0 %vm875_vm1, %v1786_v50 }
 0x6fd   : > { %2653 = vmatprep.mubr.msk.f32.mxu0 %vm3574_vm0, %v3575_v1  ;;  %v1904_v1 = vld [vmem:[#allocation20 + $0x10] sm:$0xff] }
 0x6fe   : > { %v2684_v4 = vpack.c.bf16 %v1905_v3, %v1904_v1 }
 0x700   : > { %2685 = vmatpush3.bf16.msra.mxu1 %v2684_v4 }
 0x7cf   : > { %v1867_v52 = vpop.f32.mrb[6].mxu0 }
 0x7d0   : > { %v1868_v53 = vadd.f32 %v2455_v51, %v1867_v52  ;;  %v2609_v54 = vpop.f32.mrb[7].mxu0 }
 0x7d2   : > { %v1871_v55 = vadd.f32 %v1868_v53, %v4239_v10  ;;  %v1987_v10 = vld [vmem:[#allocation23] sm:$0xff] }
 0x7d3   : > { %v2687_v7 = vpack.c.bf16 %v1988_v5, %v1987_v10 }
 0x7d4   : > { %v1874_v56 = vsel %vm875_vm1, %v1871_v55, 0.0 }
 0x7d5   : > { %1875 = vadd.xlane.f32.xlu0 %v1874_v56  ;;  %2688 = vmatpush3.bf16.msra.mxu0 %v2687_v7 }
 0x7d6   : > { %2689 = vmatprep.subr.bf16.mxu0 %v3573_v0 }
 0x7d9   : > { %2691 = vmatpush3.bf16.msra.mxu0 %v2690_v9 }
 0x7da   : > { %2692 = vmatprep.subr.bf16.mxu0 %v3573_v0 }
 0x7dd   : > { %2694 = vmatpush3.bf16.msra.mxu0 %v2693_v13 }
 0x7de   : > { %2695 = vmatprep.subr.bf16.mxu0 %v3573_v0 }
 0x7e1   : > { %2697 = vmatpush3.bf16.msra.mxu0 %v2696_v16 }
 0x7e2   : > { %2698 = vmatprep.subr.bf16.mxu0 %v3573_v0 }
 0x7e5   : > { %2700 = vmatpush3.bf16.msra.mxu0 %v2699_v19 }
 0x7e6   : > { %2701 = vmatprep.subr.bf16.mxu0 %v3573_v0 }
 0x7e9   : > { %2703 = vmatpush3.bf16.msra.mxu0 %v2702_v22 }
 0x7ea   : > { %2704 = vmatprep.subr.bf16.mxu0 %v3573_v0 }
 0x7ed   : > { %2706 = vmatpush3.bf16.msra.mxu0 %v2705_v25 }
 0x7ee   : > { %2707 = vmatprep.subr.bf16.mxu0 %v3573_v0 }
 0x7f1   : > { %2709 = vmatpush3.bf16.msra.mxu0 %v2708_v37 }
 0x862   : > { %v1876_v57 = vpop.xlane.xlu0 %1875 }
 0x863   : > { %v1878_v58 = vmul.f32 0.03125, %v1876_v57  ;;  %v2462_v57 = vld [vmem:[#allocation26] ss:$0 sm:$0xff] }
 0x865   : > { %v1879_v59 = vsub.f32 %v1871_v55, %v1878_v58 }
 0x867   : > { %v1880_v60 = vmul.f32 %v1879_v59, %v1879_v59 }
 0x869   : > { %v1881_v61 = vsel %vm875_vm1, %v1880_v60, 0.0 }
 0x86a   : > { %1882 = vadd.xlane.f32.xlu1 %v1881_v61 }
 0x8f7   : > { %v1883_v26 = vpop.xlane.xlu1 %1882 }
 0x8f8   : > { %v1884_v27 = vmul.f32 0.03125, %v1883_v26 }
 0x8fa   : > { %v1885_v28 = vadd.f32 1e-05, %v1884_v27 }
 0x8fc   : > { %2946 = vrsqrt.f32 %v1885_v28 }
 0x906   : > { %v2947_v29 = vpop.eup %2946 }
 0x907   : > { %v1887_v31 = vmul.f32 %v2947_v29, %v1879_v59  ;;  %v2463_v59 = vld [vmem:[#allocation28] ss:$0 sm:$0xff] }
 0x909   : > { %v1894_v33 = vmul.f32 %v2457_v30, %v1887_v31 }
 0x90b   : > { %v1901_v34 = vadd.f32 %v2458_v32, %v1894_v33 }
 0x90d   : > { %2619 = vmatmul.mubr.msk.f32.vlgmr.msra.gmra.mrb[16].mxu1 %vm875_vm1, %v1901_v34 }
 0x9e0   : > { %v1982_v39 = vpop.f32.mrb[16].mxu1 }
 0x9e1   : > { %v1983_v40 = vadd.f32 %v2459_v38, %v1982_v39  ;;  %v2620_v0 = vpop.f32.mrb[17].mxu1 }
 0x9e3   : > { %v1986_v41 = vmax.f32 %v1983_v40, 0.0 }
 0x9e5   : > { %2654 = vmatmul.mubr.f32.vlgmr.msra.gmra.mrb[8].mxu0 %v1986_v41 }
 0xab8   : > { %v2076_v43 = vpop.f32.mrb[8].mxu0 }
 0xab9   : > { %v2077_v44 = vadd.f32 %v2461_v42, %v2076_v43  ;;  %v2655_v45 = vpop.f32.mrb[9].mxu0 }
 0xabb   : > { %v2080_v46 = vadd.f32 %v2077_v44, %v1901_v34 }
 0xabd   : > { %v2083_v47 = vsel %vm875_vm1, %v2080_v46, 0.0 }
 0xabe   : > { %2084 = vadd.xlane.f32.xlu0 %v2083_v47 }
 0xb4b   : > { %v2085_v48 = vpop.xlane.xlu0 %2084 }
 0xb4c   : > { %v2086_v49 = vmul.f32 0.03125, %v2085_v48 }
 0xb4e   : > { %v2087_v50 = vsub.f32 %v2080_v46, %v2086_v49 }
 0xb50   : > { %v2088_v51 = vmul.f32 %v2087_v50, %v2087_v50 }
 0xb52   : > { %v2089_v52 = vsel %vm875_vm1, %v2088_v51, 0.0 }
 0xb53   : > { %2090 = vadd.xlane.f32.xlu0 %v2089_v52 }
 0xbe0   : > { %v2091_v53 = vpop.xlane.xlu0 %2090 }
 0xbe1   : > { %v2092_v54 = vmul.f32 0.03125, %v2091_v53 }
 0xbe3   : > { %v2093_v55 = vadd.f32 1e-05, %v2092_v54 }
 0xbe5   : > { %2948 = vrsqrt.f32 %v2093_v55 }
 0xbef   : > { %v2949_v56 = vpop.eup %2948 }
 0xbf0   : > { %v2095_v58 = vmul.f32 %v2949_v56, %v2087_v50 }
 0xbf2   : > { %v2102_v60 = vmul.f32 %v2462_v57, %v2095_v58 }
 0xbf4   : > { %v2109_v61 = vadd.f32 %v2463_v59, %v2102_v60 }
 0xbf6   : > { %2110 = vst.msk [vmem:[%s865_s2] sm:$0xff] %vm875_vm1, %v2109_v61 }
 0xbf7   : > { %3447 = shalt.err (!%p3444_p9)
}
 0xbf8   : > { %s3448_s11 = scalar_lea.hbm %s4357_s4, 128  ;;  %s3452_s26 = scalar_lea.hbm %s4534_s7, 256 }
 0xbf9   : > { %p3449_p2 = scmp.ne.s32.totalorder %s4357_s4, %s3448_s11  ;;  %p3453_p13 = scmp.lt.u32.totalorder %s4357_s4, %s4534_s7 }
 0xbfa   : > { %p3454_p11 = scmp.lt.u32.totalorder %s3452_s26, %s3448_s11  ;;  %p3456_p10 = scmp.lt.u32.totalorder %s3448_s11, %s4357_s4 }
 0xbfb   : > { %p3450_p0 = pnand %p3449_p2, %p4535_p7 }
 0xbfc   : > { %p3455_p6 = por %p3454_p11, %p3453_p13 }
 0xbfd   : > { %p3451_p4 = pneg %p3450_p0 }
 0xbfe   : > { %p3457_p8 = por %p3456_p10, %p3455_p6 }
 0xc00   : > { %p3458_p12 = pnand %p3457_p8, %p3451_p4 }
 0xc02   : > { %3461 = shalt.err (!%p3458_p12)
}
 0xc03   : > { %2770 = dma.vmem_to_hbm [thread:$0]  (%p4535_p7), %s4359_s9, 128, %s4357_s4, %s2112_s16  }
 0xc04 PF: > { %s2138_s3 = sand.u32 1, %s3532_s24   ;;  %p4536_p3 = scmp.ne.s32.totalorder %s4492_s23, 0 }
 0xc05   : > { %p4537_p5 = scmp.ge.s32.totalorder %s3552_s29, 2  ;;  %s2139_s12 = scalar_lea.sflag [#allocation4], %s2138_s3 }
 0xc07   : > { %p2826_p1 = pnand %p4537_p5, %p4536_p3 }
 0xc09   : > { %3527 = dma.done.wait (!%p2826_p1), %s2139_s12, 128  }
 0xc0a   : > { %3529 = vsyncadd (!%p2826_p1), %s2139_s12, 4294967168  ;;  %s45_s29 = sadd.s32 1, %s3552_s29   ;;  %s4538_s21 = sld [smem:[#allocation41_spill]] }
 0xc0b   : > { %p42_p9 = scmp.ge.s32.totalorder %s45_s29, 4   ;;  %s4539_s26 = sld [smem:[#allocation45_spill]] }
 0xc0c   : > { %s4540_s19 = sld [smem:[#allocation44_spill]]  ;;  %s4541_s24 = smov %s3536_s25 }
 0xc0d   : > { %s4543_s27 = smov %s3548_s28  ;;  %44 = sbr.rel (!%p42_p9) target bundleno = 35 (0x23), region = 222 }
 0xc10   : > { %s4542_s25 = smov %s4538_s21 }
 0xc12   : > { %s4544_s28 = smov %s4540_s19 }
 0xc14   :  { %2144 = vsyncpa [#allocation3], 1 }
 0xc15   :  { %2146 = vsyncpa [#allocation3 + $0x1], 1 }
 0xc16   :  { %2147 = vsyncpa [#allocation6], 1 }
 0xc17   :  { %2149 = vsyncpa [#allocation6 + $0x1], 1 }
 0xc18   :  { %2150 = vsyncpa [#allocation9], 1 }
 0xc19   :  { %2152 = vsyncpa [#allocation9 + $0x1], 1 }
 0xc1a   :  { %2153 = vsyncpa [#allocation12], 1 }
 0xc1b   :  { %2154 = vsyncpa [#allocation15], 1 }
 0xc1c   :  { %2155 = vsyncpa [#allocation18], 1 }
 0xc1d   :  { %2156 = vsyncpa [#allocation21], 1 }
 0xc1e   :  { %2157 = vsyncpa [#allocation24], 1 }
 0xc1f   :  { %2158 = vsyncpa [#allocation27], 1 }
 0xc20   :  { %2159 = vsyncpa [#allocation4], 1 }
 0xc21   :  { %2161 = vsyncpa [#allocation4 + $0x1], 1 }

</bundles_post_ra>
